<compile_context>
chip_gen: v5e
topology: v5e:2x2
jax: 0.10.0
libtpu: 0.0.40
codegen_flags: <defaults>
</compile_context>

<pallas_src>
import jax
import jax.numpy as jnp
from jax.experimental import pallas as pl
from jax.experimental.pallas import tpu as pltpu


def _basic_linear_kernel(x_ref, w_ref, b_ref, o_ref):
    # x_ref: (tile_n, in_f) f32   -- activation tile in natural layout
    # w_ref: (in_f, out_f) bf16   -- pre-transposed, pre-cast, grid-invariant (resident)
    # b_ref: (1, out_f)    f32
    # o_ref: (tile_n, out_f) f32
    x_bf = x_ref[...].astype(jnp.bfloat16)
    # MXU matmul with f32 accumulation.
    acc = jnp.dot(x_bf, w_ref[...], preferred_element_type=jnp.float32)
    # Bias + LeakyReLU(0.2) in f32 on the VPU.
    acc = acc + b_ref[...]
    acc = jnp.where(acc > 0, acc, 0.2 * acc)
    # Dropout: identity at inference time.
    o_ref[...] = acc.astype(o_ref.dtype)


def basic_linear_forward(x, weight, bias, *, tile_n=1024):
    """x: (N, in_f) f32; weight: (out_f, in_f) (PyTorch layout); bias: (out_f,)."""
    N, in_f = x.shape
    out_f = weight.shape[0]
    assert weight.shape == (out_f, in_f)
    assert bias.shape == (out_f,)
    assert tile_n % 128 == 0, "tile_n should be a multiple of 128 (lane width)"

    num_tiles = pl.cdiv(N, tile_n)  # ragged last block allowed; no padding pass

    # Tiny, grid-invariant weight: transpose + cast ONCE in the wrapper
    # (hoisted out of the kernel body), stays resident in VMEM.
    w_t = weight.T.astype(jnp.bfloat16)   # (in_f, out_f), ~4 KiB
    b2 = bias.reshape(1, out_f)

    cost = pl.CostEstimate(
        flops=2 * N * in_f * out_f,
        transcendentals=0,
        bytes_accessed=4 * N * in_f + 4 * N * out_f + 2 * in_f * out_f + 4 * out_f,
    )

    return pl.pallas_call(
        _basic_linear_kernel,
        out_shape=jax.ShapeDtypeStruct((N, out_f), x.dtype),
        grid_spec=pltpu.PrefetchScalarGridSpec(
            num_scalar_prefetch=0,
            grid=(num_tiles,),
            in_specs=[
                pl.BlockSpec((tile_n, in_f), lambda i: (i, 0)),   # activations
                pl.BlockSpec((in_f, out_f), lambda i: (0, 0)),    # weight (resident)
                pl.BlockSpec((1, out_f), lambda i: (0, 0)),       # bias   (resident)
            ],
            out_specs=pl.BlockSpec((tile_n, out_f), lambda i: (i, 0)),
        ),
        compiler_params=pltpu.CompilerParams(
            dimension_semantics=("parallel",),
        ),
        cost_estimate=cost,
    )(x, w_t, b2)


def reference_forward(x, weight, bias):
    h = x @ weight.T + bias
    return jnp.where(h > 0, h, 0.2 * h)   # Dropout is identity in eval mode


if __name__ == "__main__":
    key = jax.random.PRNGKey(0)

    # Shapes consistent with the module (post_layer context).  Batch chosen so
    # the grid has 3 steps (>=2 feeds both v7x TensorCores) and the last block
    # is ragged (exercises padding-free masking: 2500 % 1024 = 452).
    in_f, out_f = 64, 32
    batch = 2500
    tile_n = 1024

    key, kw, kb, kx = jax.random.split(key, 4)
    bound = 1.0 / (in_f ** 0.5)  # PyTorch Linear default init range
    weight = jax.random.uniform(kw, (out_f, in_f), jnp.float32, -bound, bound)
    bias = jax.random.uniform(kb, (out_f,), jnp.float32, -bound, bound)
    x = jax.random.normal(kx, (batch, in_f), jnp.float32)

    out = basic_linear_forward(x, weight, bias, tile_n=tile_n)
    out = jax.block_until_ready(out)

    ref = reference_forward(x, weight, bias)
    assert out.shape == (batch, out_f), out.shape
    # bf16 MXU operands (f32 accumulation) vs f32 reference -> relaxed tolerance.
    assert jnp.allclose(out, ref, atol=3e-2, rtol=3e-2), "mismatch vs reference"

    print("KERNEL_OK")
</pallas_src>

<mosaic_0001>
module attributes {stable_mosaic.version = 11 : i64} {
  func.func @_basic_linear_kernel(%arg0: i32, %arg1: memref<1024x64xf32, #tpu.memory_space<vmem>>, %arg2: memref<64x32xbf16, #tpu.memory_space<vmem>>, %arg3: memref<1x32xf32, #tpu.memory_space<vmem>>, %arg4: memref<1024x32xf32, #tpu.memory_space<vmem>>) attributes {dimension_semantics = [#tpu.dimension_semantics<parallel>], iteration_bounds = array<i64: 3>, scalar_prefetch = 0 : i64, scratch_operands = 0 : i64, tpu.core_type = #tpu.core_type<tc>, window_params = [{transform_indices = @transform_0, window_bounds = array<i64: 1024, 64>}, {pipeline_mode = #tpu.pipeline_mode<synchronous>, transform_indices = @transform_1, window_bounds = array<i64: 64, 32>}, {pipeline_mode = #tpu.pipeline_mode<synchronous>, transform_indices = @transform_2, window_bounds = array<i64: 1, 32>}, {transform_indices = @transform_3, window_bounds = array<i64: 1024, 32>}]} {
    %c0 = arith.constant 0 : index
    %c0_0 = arith.constant 0 : index
    %0 = vector.load %arg1[%c0, %c0_0] : memref<1024x64xf32, #tpu.memory_space<vmem>>, vector<1024x64xf32>
    %1 = arith.truncf %0 : vector<1024x64xf32> to vector<1024x64xbf16>
    %c0_1 = arith.constant 0 : index
    %c0_2 = arith.constant 0 : index
    %2 = vector.load %arg2[%c0_1, %c0_2] : memref<64x32xbf16, #tpu.memory_space<vmem>>, vector<64x32xbf16>
    %cst = arith.constant dense<0.000000e+00> : vector<1024x32xf32>
    %3 = tpu.matmul %1, %2, %cst {dimension_numbers = #tpu.dot_dimension_numbers<[1], [0], [0], [1], [0, 0, 1, 1], [], []>} : vector<1024x64xbf16>, vector<64x32xbf16>, vector<1024x32xf32> -> vector<1024x32xf32>
    %c0_3 = arith.constant 0 : index
    %c0_4 = arith.constant 0 : index
    %4 = vector.load %arg3[%c0_3, %c0_4] : memref<1x32xf32, #tpu.memory_space<vmem>>, vector<1x32xf32>
    %5 = vector.broadcast %4 : vector<1x32xf32> to vector<1024x32xf32>
    %6 = arith.addf %3, %5 : vector<1024x32xf32>
    %cst_5 = arith.constant 0.000000e+00 : f32
    %7 = vector.broadcast %cst_5 : f32 to vector<1024x32xf32>
    %8 = arith.cmpf ogt, %6, %7 : vector<1024x32xf32>
    %cst_6 = arith.constant 2.000000e-01 : f32
    %9 = vector.broadcast %cst_6 : f32 to vector<1024x32xf32>
    %10 = arith.mulf %9, %6 : vector<1024x32xf32>
    %11 = arith.select %8, %6, %10 : vector<1024x32xi1>, vector<1024x32xf32>
    %c0_7 = arith.constant 0 : index
    %c0_8 = arith.constant 0 : index
    %12 = vector.load %arg4[%c0_7, %c0_8] : memref<1024x32xf32, #tpu.memory_space<vmem>>, vector<1024x32xf32>
    tpu.vector_store %arg4[%c0_7, %c0_8], %11 {strides = array<i32>} : memref<1024x32xf32, #tpu.memory_space<vmem>>, vector<1024x32xf32>,
    return
  }
  func.func @transform_0(%arg0: i32) -> (i32, i32) {
    %c0_i32 = arith.constant 0 : i32
    %c0_i32_0 = arith.constant 0 : i32
    return %arg0, %c0_i32 : i32, i32
  }
  func.func @transform_1(%arg0: i32) -> (i32, i32) {
    %c0_i32 = arith.constant 0 : i32
    %c0_i32_0 = arith.constant 0 : i32
    %c0_i32_1 = arith.constant 0 : i32
    return %c0_i32, %c0_i32_0 : i32, i32
  }
  func.func @transform_2(%arg0: i32) -> (i32, i32) {
    %c0_i32 = arith.constant 0 : i32
    %c0_i32_0 = arith.constant 0 : i32
    %c0_i32_1 = arith.constant 0 : i32
    return %c0_i32, %c0_i32_0 : i32, i32
  }
  func.func @transform_3(%arg0: i32) -> (i32, i32) {
    %c0_i32 = arith.constant 0 : i32
    %c0_i32_0 = arith.constant 0 : i32
    return %arg0, %c0_i32 : i32, i32
  }
}

</mosaic_0001>

<bundles_post_ra>
// kernel: tpu_custom_call.1
= control target key start
LH: loop header
LB: loop body
LE: loop exit
PB: predicated region body
PF: predicated region fallthrough
CT: control target
= control target key end

     0   :  { %s2117_s12 = smov 0   ;;  %s2119_s13 = smov 0   ;;  %s2899_s0 = inlined_call_operand.vmem [shape: f32[2500,64], index: 0, kind: input, shape index: {}]   ;;  %s2900_s1 = inlined_call_operand.vmem [shape: bf16[64,32], index: 1, kind: input, shape index: {}]   ;;  %s2901_s2 = inlined_call_operand.vmem [shape: f32[1,32], index: 2, kind: input, shape index: {}]   ;;  %s2902_s3 = inlined_call_operand.vmem [shape: f32[2500,32], index: 3, kind: output, shape index: {}]  }
   0x1   :  { %s2121_s14 = smov 0  }
   0x2 LB: > { %s2130_s15 = sadd.s32 4294967295, %s2063_s14   ;;  %s2132_s16 = sadd.s32 1, %s2063_s14   ;;  %s2063_s14 = sphi %s2121_s14, %s2911_s14   ;;  %s2059_s13 = sphi %s2119_s13, %s2910_s13   ;;  %s2055_s12 = sphi %s2117_s12, %s2909_s12  }
   0x3   : > { %s85_s17 = ssub.s32 %s2063_s14, %s2132_s16  ;;  %s88_s18 = sadd.s32 1, %s2059_s13 }
   0x4   : > { %p86_p0 = scmp.eq.s32.totalorder %s85_s17, 0  ;;  %p98_p1 = scmp.ne.s32.totalorder %s2059_s13, %s2055_s12 }
   0x5   : > { %p99_p2 = scmp.eq.s32.totalorder %s2130_s15, 2  ;;  %p1799_p3 = scmp.ge.s32.totalorder %s2063_s14, 1 }
   0x6   : > { %s2140_s19 = scalar_select %p86_p0, %s2059_s13, %s88_s18  }
   0x7   : > { %p2142_p4 = por %p99_p2, %p98_p1  ;;  %p146_p5 = scmp.lt.s32.totalorder %s2063_s14, 4 }
   0x9   : > { %p147_p6 = pnand %p1799_p3, %p146_p5 }
   0xa   : > { %s2150_s23 = sshll.u32 (!%p147_p6), %s2130_s15, 7  ;;  %s170_s10 = sand.u32 (!%p147_p6), 1, %s2055_s12  }
   0xb   : > { %150 = sbr.rel (%p147_p6) target bundleno = 485 (0x1e5), region = 32  ;;  %p178_p7 = scmp.lt.s32.totalorder (!%p147_p6), %s2150_s23, 312 }
   0xc   : > { %s1800_s11 = sshll.u32 (!%p147_p6), %s170_s10, 10 }
   0xd   : > { %s2284_s12 = scalar_lea.vmem (!%p147_p6), [#allocation2], %s1800_s11  }
  0x10   : > { %v1903_v0 = vld [vmem:[%s2900_s1 + $0x18] sm:$0xff]  ;;  %v1902_v1 = vld [vmem:[%s2900_s1 + $0x10] sm:$0xff]  ;;  %s179_s26 = scalar_select %p178_p7, %s2150_s23, 312  ;;  %v1901_v2 = vld [vmem:[%s2900_s1 + $0x8] sm:$0xff]  ;;  %vm421_vm0 = vcmask 523264   ;;  %vm1327_vm1 = vcmask 261120  }
  0x11   : > { %618 = vmatpush.bf16.msra.mxu0 %v1903_v0  ;;  %1907 = vmatpush.bf16.msra.mxu1 %v1903_v0  ;;  %v1900_v3 = vld [vmem:[%s2900_s1] sm:$0xff]  ;;  %s1464_s18 = ssub.s32 (%p2142_p4), 313, %s2150_s23  ;;  %s1904_s21 = sshll.u32 (%p2142_p4), %s2130_s15, 10 }
  0x12   : > { %1908 = vmatpush.bf16.msra.mxu2 %v1903_v0  ;;  %1909 = vmatpush.bf16.msra.mxu3 %v1903_v0  ;;  %s1802_s27 = sshll.u32 %s179_s26, 3  ;;  %p1465_p8 = scmp.lt.s32.totalorder (%p2142_p4), %s1464_s18, 128 }
  0x13   : > { %s2163_s5 = scalar_lea.vmem %s2899_s0, %s1802_s27  ;;  %s2764_s25 = scalar_lea.vmem (%p2142_p4), %s2902_s3, %s1904_s21  }
  0x14   : > { %v193_v4 = vld [vmem:[%s2163_s5] sm:$0xff]  ;;  %v194_v5 = vld [vmem:[%s2163_s5 + $0x8] sm:$0xff]  ;;  %v195_v16 = vld [vmem:[%s2163_s5 + $0x10] sm:$0xff] }
  0x15   : > { %619 = vmatpush.bf16.msra.mxu0 %v1902_v1  ;;  %1910 = vmatpush.bf16.msra.mxu1 %v1902_v1  ;;  %v225_v6 = vld [vmem:[%s2163_s5 + $0x100] sm:$0xff]  ;;  %v226_v7 = vld [vmem:[%s2163_s5 + $0x108] sm:$0xff]  ;;  %v321_v12 = vpack.c.bf16 %v194_v5, %v193_v4  ;;  %v196_v17 = vld [vmem:[%s2163_s5 + $0x18] sm:$0xff] }
  0x16   : > { %1911 = vmatpush.bf16.msra.mxu2 %v1902_v1  ;;  %1912 = vmatpush.bf16.msra.mxu3 %v1902_v1  ;;  %v257_v8 = vld [vmem:[%s2163_s5 + $0x200] sm:$0xff]  ;;  %v258_v9 = vld [vmem:[%s2163_s5 + $0x208] sm:$0xff]  ;;  %v337_v13 = vpack.c.bf16 %v226_v7, %v225_v6  ;;  %v227_v18 = vld [vmem:[%s2163_s5 + $0x110] sm:$0xff]  ;;  %v322_v24 = vpack.c.bf16 %v196_v17, %v195_v16 }
  0x17   : > { %v289_v10 = vld [vmem:[%s2163_s5 + $0x300] sm:$0xff]  ;;  %v290_v11 = vld [vmem:[%s2163_s5 + $0x308] sm:$0xff]  ;;  %v353_v14 = vpack.c.bf16 %v258_v9, %v257_v8  ;;  %v228_v19 = vld [vmem:[%s2163_s5 + $0x118] sm:$0xff] }
  0x18   : > { %v369_v15 = vpack.c.bf16 %v290_v11, %v289_v10  ;;  %v259_v20 = vld [vmem:[%s2163_s5 + $0x210] sm:$0xff]  ;;  %v260_v21 = vld [vmem:[%s2163_s5 + $0x218] sm:$0xff]  ;;  %v338_v25 = vpack.c.bf16 %v228_v19, %v227_v18  ;;  %v197_v28 = vld [vmem:[%s2163_s5 + $0x20] sm:$0xff] }
  0x19   : > { %620 = vmatpush.bf16.msra.mxu0 %v1901_v2  ;;  %1913 = vmatpush.bf16.msra.mxu1 %v1901_v2  ;;  %v291_v22 = vld [vmem:[%s2163_s5 + $0x310] sm:$0xff]  ;;  %v292_v23 = vld [vmem:[%s2163_s5 + $0x318] sm:$0xff]  ;;  %v354_v26 = vpack.c.bf16 %v260_v21, %v259_v20  ;;  %v198_v29 = vld [vmem:[%s2163_s5 + $0x28] sm:$0xff] }
  0x1a   : > { %1914 = vmatpush.bf16.msra.mxu2 %v1901_v2  ;;  %1915 = vmatpush.bf16.msra.mxu3 %v1901_v2  ;;  %v370_v27 = vpack.c.bf16 %v292_v23, %v291_v22  ;;  %v229_v30 = vld [vmem:[%s2163_s5 + $0x120] sm:$0xff]  ;;  %v230_v31 = vld [vmem:[%s2163_s5 + $0x128] sm:$0xff]  ;;  %v323_v36 = vpack.c.bf16 %v198_v29, %v197_v28  ;;  %v199_v40 = vld [vmem:[%s2163_s5 + $0x30] sm:$0xff] }
  0x1b   : > { %v261_v32 = vld [vmem:[%s2163_s5 + $0x220] sm:$0xff]  ;;  %v262_v33 = vld [vmem:[%s2163_s5 + $0x228] sm:$0xff]  ;;  %v339_v37 = vpack.c.bf16 %v230_v31, %v229_v30  ;;  %v200_v41 = vld [vmem:[%s2163_s5 + $0x38] sm:$0xff] }
  0x1c   : > { %v293_v34 = vld [vmem:[%s2163_s5 + $0x320] sm:$0xff]  ;;  %v294_v35 = vld [vmem:[%s2163_s5 + $0x328] sm:$0xff]  ;;  %v355_v38 = vpack.c.bf16 %v262_v33, %v261_v32  ;;  %v231_v42 = vld [vmem:[%s2163_s5 + $0x130] sm:$0xff]  ;;  %v324_v48 = vpack.c.bf16 %v200_v41, %v199_v40 }
  0x1d   : > { %621 = vmatpush.bf16.msra.mxu0 %v1900_v3  ;;  %1916 = vmatpush.bf16.msra.mxu1 %v1900_v3  ;;  %v371_v39 = vpack.c.bf16 %v294_v35, %v293_v34  ;;  %v232_v43 = vld [vmem:[%s2163_s5 + $0x138] sm:$0xff]  ;;  %v263_v44 = vld [vmem:[%s2163_s5 + $0x230] sm:$0xff]  ;;  %v201_v52 = vld [vmem:[%s2163_s5 + $0x40] sm:$0xff] }
  0x1e   : > { %1917 = vmatpush.bf16.msra.mxu2 %v1900_v3  ;;  %1918 = vmatpush.bf16.msra.mxu3 %v1900_v3  ;;  %v264_v45 = vld [vmem:[%s2163_s5 + $0x238] sm:$0xff]  ;;  %v295_v46 = vld [vmem:[%s2163_s5 + $0x330] sm:$0xff]  ;;  %v340_v49 = vpack.c.bf16 %v232_v43, %v231_v42  ;;  %v202_v53 = vld [vmem:[%s2163_s5 + $0x48] sm:$0xff] }
  0x1f   : > { %v296_v47 = vld [vmem:[%s2163_s5 + $0x338] sm:$0xff]  ;;  %v356_v50 = vpack.c.bf16 %v264_v45, %v263_v44  ;;  %v233_v54 = vld [vmem:[%s2163_s5 + $0x140] sm:$0xff]  ;;  %v234_v55 = vld [vmem:[%s2163_s5 + $0x148] sm:$0xff]  ;;  %v325_v60 = vpack.c.bf16 %v202_v53, %v201_v52 }
  0x20   : > { %1819 = vmatmul.msk.bf16.vlgmr.msra.gmra.mxu0 %vm421_vm0, %v321_v12  ;;  %1835 = vmatmul.msk.bf16.vlgmr.msra.gmra.mxu1 %vm421_vm0, %v337_v13  ;;  %v372_v51 = vpack.c.bf16 %v296_v47, %v295_v46  ;;  %v265_v56 = vld [vmem:[%s2163_s5 + $0x240] sm:$0xff]  ;;  %v266_v57 = vld [vmem:[%s2163_s5 + $0x248] sm:$0xff]  ;;  %v341_v61 = vpack.c.bf16 %v234_v55, %v233_v54  ;;  %v203_v0 = vld [vmem:[%s2163_s5 + $0x50] sm:$0xff] }
  0x21   : > { %1851 = vmatmul.msk.bf16.vlgmr.msra.gmra.mxu2 %vm421_vm0, %v353_v14  ;;  %1867 = vmatmul.msk.bf16.vlgmr.msra.gmra.mxu3 %vm421_vm0, %v369_v15  ;;  %v297_v58 = vld [vmem:[%s2163_s5 + $0x340] sm:$0xff]  ;;  %v298_v59 = vld [vmem:[%s2163_s5 + $0x348] sm:$0xff]  ;;  %v357_v62 = vpack.c.bf16 %v266_v57, %v265_v56  ;;  %v204_v1 = vld [vmem:[%s2163_s5 + $0x58] sm:$0xff] }
  0x22   : > { %v373_v63 = vpack.c.bf16 %v298_v59, %v297_v58  ;;  %v235_v2 = vld [vmem:[%s2163_s5 + $0x150] sm:$0xff]  ;;  %v236_v3 = vld [vmem:[%s2163_s5 + $0x158] sm:$0xff]  ;;  %v326_v8 = vpack.c.bf16 %v204_v1, %v203_v0  ;;  %v205_v12 = vld [vmem:[%s2163_s5 + $0x60] sm:$0xff] }
  0x23   : > { %v267_v4 = vld [vmem:[%s2163_s5 + $0x250] sm:$0xff]  ;;  %v268_v5 = vld [vmem:[%s2163_s5 + $0x258] sm:$0xff]  ;;  %v342_v9 = vpack.c.bf16 %v236_v3, %v235_v2  ;;  %v206_v13 = vld [vmem:[%s2163_s5 + $0x68] sm:$0xff] }
  0x24   : > { %v299_v6 = vld [vmem:[%s2163_s5 + $0x350] sm:$0xff]  ;;  %v300_v7 = vld [vmem:[%s2163_s5 + $0x358] sm:$0xff]  ;;  %v358_v10 = vpack.c.bf16 %v268_v5, %v267_v4  ;;  %v237_v14 = vld [vmem:[%s2163_s5 + $0x160] sm:$0xff]  ;;  %v327_v20 = vpack.c.bf16 %v206_v13, %v205_v12 }
  0x25   : > { %v374_v11 = vpack.c.bf16 %v300_v7, %v299_v6  ;;  %v238_v15 = vld [vmem:[%s2163_s5 + $0x168] sm:$0xff]  ;;  %v269_v16 = vld [vmem:[%s2163_s5 + $0x260] sm:$0xff]  ;;  %v271_v28 = vld [vmem:[%s2163_s5 + $0x270] sm:$0xff] }
  0x26   : > { %v270_v17 = vld [vmem:[%s2163_s5 + $0x268] sm:$0xff]  ;;  %v301_v18 = vld [vmem:[%s2163_s5 + $0x360] sm:$0xff]  ;;  %v343_v21 = vpack.c.bf16 %v238_v15, %v237_v14  ;;  %v272_v29 = vld [vmem:[%s2163_s5 + $0x278] sm:$0xff] }
  0x27   : > { %v302_v19 = vld [vmem:[%s2163_s5 + $0x368] sm:$0xff]  ;;  %v359_v22 = vpack.c.bf16 %v270_v17, %v269_v16  ;;  %v303_v30 = vld [vmem:[%s2163_s5 + $0x370] sm:$0xff]  ;;  %v304_v31 = vld [vmem:[%s2163_s5 + $0x378] sm:$0xff]  ;;  %v360_v34 = vpack.c.bf16 %v272_v29, %v271_v28 }
  0x28   : > { %v375_v23 = vpack.c.bf16 %v302_v19, %v301_v18  ;;  %v376_v35 = vpack.c.bf16 %v304_v31, %v303_v30  ;;  %v242_v40 = vld [vmem:[%s2163_s5 + $0x188] sm:$0xff]  ;;  %v273_v41 = vld [vmem:[%s2163_s5 + $0x280] sm:$0xff]  ;;  %v211_v3 = vld [vmem:[%s2163_s5 + $0x90] sm:$0xff] }
  0x29   : > { %v274_v42 = vld [vmem:[%s2163_s5 + $0x288] sm:$0xff]  ;;  %v305_v43 = vld [vmem:[%s2163_s5 + $0x380] sm:$0xff]  ;;  %v212_v4 = vld [vmem:[%s2163_s5 + $0x98] sm:$0xff] }
  0x2a   : > { %v306_v44 = vld [vmem:[%s2163_s5 + $0x388] sm:$0xff]  ;;  %v276_v14 = vld [vmem:[%s2163_s5 + $0x298] sm:$0xff]  ;;  %v307_v15 = vld [vmem:[%s2163_s5 + $0x390] sm:$0xff]  ;;  %v330_v19 = vpack.c.bf16 %v212_v4, %v211_v3 }
  0x2b   : > { %v308_v16 = vld [vmem:[%s2163_s5 + $0x398] sm:$0xff] }
  0x30   : > { %1820 = vmatmul.msk.bf16.gmra.mxu0 %vm421_vm0, %v322_v24  ;;  %1836 = vmatmul.msk.bf16.gmra.mxu1 %vm421_vm0, %v338_v25  ;;  %v207_v24 = vld [vmem:[%s2163_s5 + $0x70] sm:$0xff]  ;;  %v208_v25 = vld [vmem:[%s2163_s5 + $0x78] sm:$0xff] }
  0x31   : > { %1852 = vmatmul.msk.bf16.gmra.mxu2 %vm421_vm0, %v354_v26  ;;  %1868 = vmatmul.msk.bf16.gmra.mxu3 %vm421_vm0, %v370_v27  ;;  %v239_v26 = vld [vmem:[%s2163_s5 + $0x170] sm:$0xff]  ;;  %v240_v27 = vld [vmem:[%s2163_s5 + $0x178] sm:$0xff]  ;;  %v328_v32 = vpack.c.bf16 %v208_v25, %v207_v24 }
  0x32   : > { %v344_v33 = vpack.c.bf16 %v240_v27, %v239_v26  ;;  %v378_v26 = vpack.c.bf16 %v308_v16, %v307_v15 }
  0x40   : > { %1821 = vmatmul.msk.bf16.gmra.mxu0 %vm421_vm0, %v323_v36  ;;  %1837 = vmatmul.msk.bf16.gmra.mxu1 %vm421_vm0, %v339_v37  ;;  %v2267_v36 = vld [vmem:[%s2901_s2] ss:$0 sm:$0xff] }
  0x41   : > { %1853 = vmatmul.msk.bf16.gmra.mxu2 %vm421_vm0, %v355_v38  ;;  %1869 = vmatmul.msk.bf16.gmra.mxu3 %vm421_vm0, %v371_v39  ;;  %v209_v37 = vld [vmem:[%s2163_s5 + $0x80] sm:$0xff]  ;;  %v210_v38 = vld [vmem:[%s2163_s5 + $0x88] sm:$0xff] }
  0x42   : > { %v241_v39 = vld [vmem:[%s2163_s5 + $0x180] sm:$0xff]  ;;  %v329_v45 = vpack.c.bf16 %v210_v38, %v209_v37 }
  0x43   : > { %v345_v46 = vpack.c.bf16 %v242_v40, %v241_v39 }
  0x50   : > { %1822 = vmatmul.msk.bf16.gmra.mxu0 %vm421_vm0, %v324_v48  ;;  %1838 = vmatmul.msk.bf16.gmra.mxu1 %vm421_vm0, %v340_v49  ;;  %v361_v49 = vpack.c.bf16 %v274_v42, %v273_v41 }
  0x51   : > { %1854 = vmatmul.msk.bf16.gmra.mxu2 %vm421_vm0, %v356_v50  ;;  %1870 = vmatmul.msk.bf16.gmra.mxu3 %vm421_vm0, %v372_v51  ;;  %v377_v50 = vpack.c.bf16 %v306_v44, %v305_v43 }
  0x60   : > { %1823 = vmatmul.msk.bf16.gmra.mxu0 %vm421_vm0, %v325_v60  ;;  %1839 = vmatmul.msk.bf16.gmra.mxu1 %vm421_vm0, %v341_v61 }
  0x61   : > { %1855 = vmatmul.msk.bf16.gmra.mxu2 %vm421_vm0, %v357_v62  ;;  %1871 = vmatmul.msk.bf16.gmra.mxu3 %vm421_vm0, %v373_v63 }
  0x70   : > { %1824 = vmatmul.msk.bf16.gmra.mxu0 %vm421_vm0, %v326_v8  ;;  %1840 = vmatmul.msk.bf16.gmra.mxu1 %vm421_vm0, %v342_v9  ;;  %v243_v9 = vld [vmem:[%s2163_s5 + $0x190] sm:$0xff] }
  0x71   : > { %1856 = vmatmul.msk.bf16.gmra.mxu2 %vm421_vm0, %v358_v10  ;;  %1872 = vmatmul.msk.bf16.gmra.mxu3 %vm421_vm0, %v374_v11  ;;  %v244_v10 = vld [vmem:[%s2163_s5 + $0x198] sm:$0xff]  ;;  %v275_v11 = vld [vmem:[%s2163_s5 + $0x290] sm:$0xff] }
  0x72   : > { %v362_v25 = vpack.c.bf16 %v276_v14, %v275_v11 }
  0x80   : > { %1825 = vmatmul.msk.bf16.gmra.mxu0 %vm421_vm0, %v327_v20  ;;  %1841 = vmatmul.msk.bf16.gmra.mxu1 %vm421_vm0, %v343_v21  ;;  %v346_v20 = vpack.c.bf16 %v244_v10, %v243_v9 }
  0x81   : > { %1857 = vmatmul.msk.bf16.gmra.mxu2 %vm421_vm0, %v359_v22  ;;  %1873 = vmatmul.msk.bf16.gmra.mxu3 %vm421_vm0, %v375_v23 }
  0x90   : > { %1826 = vmatmul.msk.bf16.gmra.mxu0 %vm421_vm0, %v328_v32  ;;  %1842 = vmatmul.msk.bf16.gmra.mxu1 %vm421_vm0, %v344_v33 }
  0x91   : > { %1858 = vmatmul.msk.bf16.gmra.mxu2 %vm421_vm0, %v360_v34  ;;  %1874 = vmatmul.msk.bf16.gmra.mxu3 %vm421_vm0, %v376_v35 }
  0x9d   : > { %v623_v47 = vpop.f32.mrf.mxu0  ;;  %v703_v48 = vpop.f32.mrf.mxu1 }
  0x9e   : > { %v624_v51 = vadd.f32 %v2267_v36, %v623_v47  ;;  %v704_v52 = vadd.f32 %v2267_v36, %v703_v48  ;;  %v213_v48 = vld [vmem:[%s2163_s5 + $0xa0] sm:$0xff] }
  0xa0   : > { %vm943_vm2 = vcmp.gt.f32.partialorder %v624_v51, 0.0  ;;  %v1071_v53 = vmul.f32 0.2, %v624_v51  ;;  %vm975_vm3 = vcmp.gt.f32.partialorder %v704_v52, 0.0  ;;  %v1103_v54 = vmul.f32 0.2, %v704_v52  ;;  %1827 = vmatmul.msk.bf16.gmra.mxu0 %vm421_vm0, %v329_v45  ;;  %1843 = vmatmul.msk.bf16.gmra.mxu1 %vm421_vm0, %v345_v46 }
  0xa1   : > { %1859 = vmatmul.msk.bf16.gmra.mxu2 %vm421_vm0, %v361_v49  ;;  %1875 = vmatmul.msk.bf16.gmra.mxu3 %vm421_vm0, %v377_v50  ;;  %v214_v49 = vld [vmem:[%s2163_s5 + $0xa8] sm:$0xff] }
  0xa2   : > { %v1199_v55 = vsel %vm943_vm2, %v624_v51, %v1071_v53  ;;  %v1231_v56 = vsel %vm975_vm3, %v704_v52, %v1103_v54  ;;  %v245_v54 = vld [vmem:[%s2163_s5 + $0x1a0] sm:$0xff] }
  0xa3   : > { %1328 = vst.msk [vmem:[%s2284_s12] sm:$0xff] %vm1327_vm1, %v1199_v55  ;;  %v246_v55 = vld [vmem:[%s2163_s5 + $0x1a8] sm:$0xff] }
  0xa4   : > { %1360 = vst.msk [vmem:[%s2284_s12 + $0x100] sm:$0xff] %vm1327_vm1, %v1231_v56  ;;  %v783_v57 = vpop.f32.mrf.mxu2  ;;  %v863_v58 = vpop.f32.mrf.mxu3  ;;  %v277_v56 = vld [vmem:[%s2163_s5 + $0x2a0] sm:$0xff] }
  0xa5   : > { %v784_v59 = vadd.f32 %v2267_v36, %v783_v57  ;;  %v864_v60 = vadd.f32 %v2267_v36, %v863_v58  ;;  %v625_v61 = vpop.f32.mrf.mxu0  ;;  %v705_v62 = vpop.f32.mrf.mxu1 }
  0xa6   : > { %v626_v63 = vadd.f32 %v2267_v36, %v625_v61  ;;  %v706_v0 = vadd.f32 %v2267_v36, %v705_v62  ;;  %v310_v61 = vld [vmem:[%s2163_s5 + $0x3a8] sm:$0xff] }
  0xa7   : > { %vm1007_vm4 = vcmp.gt.f32.partialorder %v784_v59, 0.0  ;;  %v1135_v1 = vmul.f32 0.2, %v784_v59  ;;  %vm1039_vm5 = vcmp.gt.f32.partialorder %v864_v60, 0.0  ;;  %v1167_v2 = vmul.f32 0.2, %v864_v60 }
  0xa8   : > { %vm944_vm6 = vcmp.gt.f32.partialorder %v626_v63, 0.0  ;;  %v1072_v5 = vmul.f32 0.2, %v626_v63  ;;  %vm976_vm7 = vcmp.gt.f32.partialorder %v706_v0, 0.0  ;;  %v1104_v6 = vmul.f32 0.2, %v706_v0 }
  0xa9   : > { %v1263_v7 = vsel %vm1007_vm4, %v784_v59, %v1135_v1  ;;  %v1295_v8 = vsel %vm1039_vm5, %v864_v60, %v1167_v2  ;;  %v278_v59 = vld [vmem:[%s2163_s5 + $0x2a8] sm:$0xff]  ;;  %v309_v60 = vld [vmem:[%s2163_s5 + $0x3a0] sm:$0xff]  ;;  %v347_v1 = vpack.c.bf16 %v246_v55, %v245_v54 }
  0xaa   : > { %1392 = vst.msk [vmem:[%s2284_s12 + $0x200] sm:$0xff] %vm1327_vm1, %v1263_v7  ;;  %v1200_v12 = vsel %vm944_vm6, %v626_v63, %v1072_v5  ;;  %v1232_v13 = vsel %vm976_vm7, %v706_v0, %v1104_v6  ;;  %v331_v0 = vpack.c.bf16 %v214_v49, %v213_v48  ;;  %v363_v6 = vpack.c.bf16 %v278_v59, %v277_v56 }
  0xab   : > { %1424 = vst.msk [vmem:[%s2284_s12 + $0x300] sm:$0xff] %vm1327_vm1, %v1295_v8  ;;  %v379_v7 = vpack.c.bf16 %v310_v61, %v309_v60 }
  0xac   : > { %1329 = vst.msk [vmem:[%s2284_s12 + $0x8] sm:$0xff] %vm1327_vm1, %v1200_v12  ;;  %v785_v17 = vpop.f32.mrf.mxu2  ;;  %v865_v18 = vpop.f32.mrf.mxu3 }
  0xad   : > { %1361 = vst.msk [vmem:[%s2284_s12 + $0x108] sm:$0xff] %vm1327_vm1, %v1232_v13  ;;  %v786_v21 = vadd.f32 %v2267_v36, %v785_v17  ;;  %v866_v22 = vadd.f32 %v2267_v36, %v865_v18  ;;  %v628_v23 = vpop.f32.mrf.mxu0  ;;  %v708_v24 = vpop.f32.mrf.mxu1 }
  0xae   : > { %v629_v27 = vadd.f32 %v2267_v36, %v628_v23  ;;  %v709_v28 = vadd.f32 %v2267_v36, %v708_v24 }
  0xaf   : > { %vm1008_vm8 = vcmp.gt.f32.partialorder %v786_v21, 0.0  ;;  %v1136_v29 = vmul.f32 0.2, %v786_v21  ;;  %vm1040_vm9 = vcmp.gt.f32.partialorder %v866_v22, 0.0  ;;  %v1168_v30 = vmul.f32 0.2, %v866_v22 }
  0xb0   : > { %vm945_vm10 = vcmp.gt.f32.partialorder %v629_v27, 0.0  ;;  %v1073_v31 = vmul.f32 0.2, %v629_v27  ;;  %vm977_vm11 = vcmp.gt.f32.partialorder %v709_v28, 0.0  ;;  %v1105_v32 = vmul.f32 0.2, %v709_v28  ;;  %1828 = vmatmul.msk.bf16.gmra.mxu0 %vm421_vm0, %v330_v19  ;;  %1844 = vmatmul.msk.bf16.gmra.mxu1 %vm421_vm0, %v346_v20 }
  0xb1   : > { %v1264_v33 = vsel %vm1008_vm8, %v786_v21, %v1136_v29  ;;  %v1296_v34 = vsel %vm1040_vm9, %v866_v22, %v1168_v30  ;;  %1860 = vmatmul.msk.bf16.gmra.mxu2 %vm421_vm0, %v362_v25  ;;  %1876 = vmatmul.msk.bf16.gmra.mxu3 %vm421_vm0, %v378_v26  ;;  %v216_v29 = vld [vmem:[%s2163_s5 + $0xb8] sm:$0xff] }
  0xb2   : > { %1393 = vst.msk [vmem:[%s2284_s12 + $0x208] sm:$0xff] %vm1327_vm1, %v1264_v33  ;;  %v1201_v35 = vsel %vm945_vm10, %v629_v27, %v1073_v31  ;;  %v1233_v37 = vsel %vm977_vm11, %v709_v28, %v1105_v32  ;;  %v215_v28 = vld [vmem:[%s2163_s5 + $0xb0] sm:$0xff] }
  0xb3   : > { %1425 = vst.msk [vmem:[%s2284_s12 + $0x308] sm:$0xff] %vm1327_vm1, %v1296_v34  ;;  %v247_v34 = vld [vmem:[%s2163_s5 + $0x1b0] sm:$0xff] }
  0xb4   : > { %1330 = vst.msk [vmem:[%s2284_s12 + $0x10] sm:$0xff] %vm1327_vm1, %v1201_v35  ;;  %v788_v38 = vpop.f32.mrf.mxu2  ;;  %v868_v39 = vpop.f32.mrf.mxu3  ;;  %v248_v35 = vld [vmem:[%s2163_s5 + $0x1b8] sm:$0xff] }
  0xb5   : > { %1362 = vst.msk [vmem:[%s2284_s12 + $0x110] sm:$0xff] %vm1327_vm1, %v1233_v37  ;;  %v789_v40 = vadd.f32 %v2267_v36, %v788_v38  ;;  %v869_v41 = vadd.f32 %v2267_v36, %v868_v39  ;;  %v630_v42 = vpop.f32.mrf.mxu0  ;;  %v710_v43 = vpop.f32.mrf.mxu1  ;;  %v279_v37 = vld [vmem:[%s2163_s5 + $0x2b0] sm:$0xff] }
  0xb6   : > { %v631_v44 = vadd.f32 %v2267_v36, %v630_v42  ;;  %v711_v45 = vadd.f32 %v2267_v36, %v710_v43  ;;  %v312_v42 = vld [vmem:[%s2163_s5 + $0x3b8] sm:$0xff] }
  0xb7   : > { %vm1009_vm12 = vcmp.gt.f32.partialorder %v789_v40, 0.0  ;;  %v1137_v46 = vmul.f32 0.2, %v789_v40  ;;  %vm1041_vm13 = vcmp.gt.f32.partialorder %v869_v41, 0.0  ;;  %v1169_v47 = vmul.f32 0.2, %v869_v41 }
  0xb8   : > { %vm946_vm14 = vcmp.gt.f32.partialorder %v631_v44, 0.0  ;;  %v1074_v50 = vmul.f32 0.2, %v631_v44  ;;  %vm978_vm15 = vcmp.gt.f32.partialorder %v711_v45, 0.0  ;;  %v1106_v51 = vmul.f32 0.2, %v711_v45 }
  0xb9   : > { %v1265_v52 = vsel %vm1009_vm12, %v789_v40, %v1137_v46  ;;  %v1297_v53 = vsel %vm1041_vm13, %v869_v41, %v1169_v47  ;;  %v280_v40 = vld [vmem:[%s2163_s5 + $0x2b8] sm:$0xff]  ;;  %v311_v41 = vld [vmem:[%s2163_s5 + $0x3b0] sm:$0xff]  ;;  %v348_v46 = vpack.c.bf16 %v248_v35, %v247_v34 }
  0xba   : > { %1394 = vst.msk [vmem:[%s2284_s12 + $0x210] sm:$0xff] %vm1327_vm1, %v1265_v52  ;;  %v1202_v57 = vsel %vm946_vm14, %v631_v44, %v1074_v50  ;;  %v1234_v58 = vsel %vm978_vm15, %v711_v45, %v1106_v51  ;;  %v332_v45 = vpack.c.bf16 %v216_v29, %v215_v28  ;;  %v364_v51 = vpack.c.bf16 %v280_v40, %v279_v37 }
  0xbb   : > { %1426 = vst.msk [vmem:[%s2284_s12 + $0x310] sm:$0xff] %vm1327_vm1, %v1297_v53  ;;  %v380_v52 = vpack.c.bf16 %v312_v42, %v311_v41 }
  0xbc   : > { %1331 = vst.msk [vmem:[%s2284_s12 + $0x18] sm:$0xff] %vm1327_vm1, %v1202_v57  ;;  %v790_v62 = vpop.f32.mrf.mxu2  ;;  %v870_v63 = vpop.f32.mrf.mxu3 }
  0xbd   : > { %1363 = vst.msk [vmem:[%s2284_s12 + $0x118] sm:$0xff] %vm1327_vm1, %v1234_v58  ;;  %v791_v2 = vadd.f32 %v2267_v36, %v790_v62  ;;  %v871_v3 = vadd.f32 %v2267_v36, %v870_v63  ;;  %v633_v4 = vpop.f32.mrf.mxu0  ;;  %v713_v5 = vpop.f32.mrf.mxu1 }
  0xbe   : > { %v634_v8 = vadd.f32 %v2267_v36, %v633_v4  ;;  %v714_v9 = vadd.f32 %v2267_v36, %v713_v5 }
  0xbf   : > { %vm1010_vm2 = vcmp.gt.f32.partialorder %v791_v2, 0.0  ;;  %v1138_v10 = vmul.f32 0.2, %v791_v2  ;;  %vm1042_vm3 = vcmp.gt.f32.partialorder %v871_v3, 0.0  ;;  %v1170_v11 = vmul.f32 0.2, %v871_v3 }
  0xc0   : > { %vm947_vm4 = vcmp.gt.f32.partialorder %v634_v8, 0.0  ;;  %v1075_v12 = vmul.f32 0.2, %v634_v8  ;;  %vm979_vm5 = vcmp.gt.f32.partialorder %v714_v9, 0.0  ;;  %v1107_v13 = vmul.f32 0.2, %v714_v9  ;;  %1829 = vmatmul.msk.bf16.gmra.mxu0 %vm421_vm0, %v331_v0  ;;  %1845 = vmatmul.msk.bf16.gmra.mxu1 %vm421_vm0, %v347_v1 }
  0xc1   : > { %v1266_v14 = vsel %vm1010_vm2, %v791_v2, %v1138_v10  ;;  %v1298_v15 = vsel %vm1042_vm3, %v871_v3, %v1170_v11  ;;  %1861 = vmatmul.msk.bf16.gmra.mxu2 %vm421_vm0, %v363_v6  ;;  %1877 = vmatmul.msk.bf16.gmra.mxu3 %vm421_vm0, %v379_v7  ;;  %v218_v10 = vld [vmem:[%s2163_s5 + $0xc8] sm:$0xff] }
  0xc2   : > { %1395 = vst.msk [vmem:[%s2284_s12 + $0x218] sm:$0xff] %vm1327_vm1, %v1266_v14  ;;  %v1203_v16 = vsel %vm947_vm4, %v634_v8, %v1075_v12  ;;  %v1235_v17 = vsel %vm979_vm5, %v714_v9, %v1107_v13  ;;  %v217_v9 = vld [vmem:[%s2163_s5 + $0xc0] sm:$0xff] }
  0xc3   : > { %1427 = vst.msk [vmem:[%s2284_s12 + $0x318] sm:$0xff] %vm1327_vm1, %v1298_v15  ;;  %v249_v15 = vld [vmem:[%s2163_s5 + $0x1c0] sm:$0xff] }
  0xc4   : > { %1332 = vst.msk [vmem:[%s2284_s12 + $0x20] sm:$0xff] %vm1327_vm1, %v1203_v16  ;;  %v793_v18 = vpop.f32.mrf.mxu2  ;;  %v873_v19 = vpop.f32.mrf.mxu3  ;;  %v250_v16 = vld [vmem:[%s2163_s5 + $0x1c8] sm:$0xff] }
  0xc5   : > { %1364 = vst.msk [vmem:[%s2284_s12 + $0x120] sm:$0xff] %vm1327_vm1, %v1235_v17  ;;  %v794_v20 = vadd.f32 %v2267_v36, %v793_v18  ;;  %v874_v21 = vadd.f32 %v2267_v36, %v873_v19  ;;  %v635_v22 = vpop.f32.mrf.mxu0  ;;  %v715_v23 = vpop.f32.mrf.mxu1  ;;  %v281_v17 = vld [vmem:[%s2163_s5 + $0x2c0] sm:$0xff] }
  0xc6   : > { %v636_v24 = vadd.f32 %v2267_v36, %v635_v22  ;;  %v716_v25 = vadd.f32 %v2267_v36, %v715_v23  ;;  %v314_v22 = vld [vmem:[%s2163_s5 + $0x3c8] sm:$0xff] }
  0xc7   : > { %vm1011_vm6 = vcmp.gt.f32.partialorder %v794_v20, 0.0  ;;  %v1139_v26 = vmul.f32 0.2, %v794_v20  ;;  %vm1043_vm7 = vcmp.gt.f32.partialorder %v874_v21, 0.0  ;;  %v1171_v27 = vmul.f32 0.2, %v874_v21 }
  0xc8   : > { %vm948_vm8 = vcmp.gt.f32.partialorder %v636_v24, 0.0  ;;  %v1076_v30 = vmul.f32 0.2, %v636_v24  ;;  %vm980_vm9 = vcmp.gt.f32.partialorder %v716_v25, 0.0  ;;  %v1108_v31 = vmul.f32 0.2, %v716_v25 }
  0xc9   : > { %v1267_v32 = vsel %vm1011_vm6, %v794_v20, %v1139_v26  ;;  %v1299_v33 = vsel %vm1043_vm7, %v874_v21, %v1171_v27  ;;  %v282_v20 = vld [vmem:[%s2163_s5 + $0x2c8] sm:$0xff]  ;;  %v313_v21 = vld [vmem:[%s2163_s5 + $0x3c0] sm:$0xff]  ;;  %v349_v26 = vpack.c.bf16 %v250_v16, %v249_v15 }
  0xca   : > { %1396 = vst.msk [vmem:[%s2284_s12 + $0x220] sm:$0xff] %vm1327_vm1, %v1267_v32  ;;  %v1204_v38 = vsel %vm948_vm8, %v636_v24, %v1076_v30  ;;  %v1236_v39 = vsel %vm980_vm9, %v716_v25, %v1108_v31  ;;  %v333_v25 = vpack.c.bf16 %v218_v10, %v217_v9  ;;  %v365_v31 = vpack.c.bf16 %v282_v20, %v281_v17 }
  0xcb   : > { %1428 = vst.msk [vmem:[%s2284_s12 + $0x320] sm:$0xff] %vm1327_vm1, %v1299_v33  ;;  %v381_v32 = vpack.c.bf16 %v314_v22, %v313_v21 }
  0xcc   : > { %1333 = vst.msk [vmem:[%s2284_s12 + $0x28] sm:$0xff] %vm1327_vm1, %v1204_v38  ;;  %v795_v43 = vpop.f32.mrf.mxu2  ;;  %v875_v44 = vpop.f32.mrf.mxu3 }
  0xcd   : > { %1365 = vst.msk [vmem:[%s2284_s12 + $0x128] sm:$0xff] %vm1327_vm1, %v1236_v39  ;;  %v796_v47 = vadd.f32 %v2267_v36, %v795_v43  ;;  %v876_v48 = vadd.f32 %v2267_v36, %v875_v44  ;;  %v638_v49 = vpop.f32.mrf.mxu0  ;;  %v718_v50 = vpop.f32.mrf.mxu1 }
  0xce   : > { %v639_v53 = vadd.f32 %v2267_v36, %v638_v49  ;;  %v719_v54 = vadd.f32 %v2267_v36, %v718_v50 }
  0xcf   : > { %vm1012_vm10 = vcmp.gt.f32.partialorder %v796_v47, 0.0  ;;  %v1140_v55 = vmul.f32 0.2, %v796_v47  ;;  %vm1044_vm11 = vcmp.gt.f32.partialorder %v876_v48, 0.0  ;;  %v1172_v56 = vmul.f32 0.2, %v876_v48 }
  0xd0   : > { %vm949_vm12 = vcmp.gt.f32.partialorder %v639_v53, 0.0  ;;  %v1077_v57 = vmul.f32 0.2, %v639_v53  ;;  %vm981_vm13 = vcmp.gt.f32.partialorder %v719_v54, 0.0  ;;  %v1109_v58 = vmul.f32 0.2, %v719_v54  ;;  %1830 = vmatmul.msk.bf16.gmra.mxu0 %vm421_vm0, %v332_v45  ;;  %1846 = vmatmul.msk.bf16.gmra.mxu1 %vm421_vm0, %v348_v46 }
  0xd1   : > { %v1268_v59 = vsel %vm1012_vm10, %v796_v47, %v1140_v55  ;;  %v1300_v60 = vsel %vm1044_vm11, %v876_v48, %v1172_v56  ;;  %1862 = vmatmul.msk.bf16.gmra.mxu2 %vm421_vm0, %v364_v51  ;;  %1878 = vmatmul.msk.bf16.gmra.mxu3 %vm421_vm0, %v380_v52  ;;  %v220_v55 = vld [vmem:[%s2163_s5 + $0xd8] sm:$0xff] }
  0xd2   : > { %1397 = vst.msk [vmem:[%s2284_s12 + $0x228] sm:$0xff] %vm1327_vm1, %v1268_v59  ;;  %v1205_v61 = vsel %vm949_vm12, %v639_v53, %v1077_v57  ;;  %v1237_v62 = vsel %vm981_vm13, %v719_v54, %v1109_v58  ;;  %v219_v54 = vld [vmem:[%s2163_s5 + $0xd0] sm:$0xff] }
  0xd3   : > { %1429 = vst.msk [vmem:[%s2284_s12 + $0x328] sm:$0xff] %vm1327_vm1, %v1300_v60  ;;  %v251_v60 = vld [vmem:[%s2163_s5 + $0x1d0] sm:$0xff] }
  0xd4   : > { %1334 = vst.msk [vmem:[%s2284_s12 + $0x30] sm:$0xff] %vm1327_vm1, %v1205_v61  ;;  %v798_v63 = vpop.f32.mrf.mxu2  ;;  %v878_v0 = vpop.f32.mrf.mxu3  ;;  %v252_v61 = vld [vmem:[%s2163_s5 + $0x1d8] sm:$0xff] }
  0xd5   : > { %1366 = vst.msk [vmem:[%s2284_s12 + $0x130] sm:$0xff] %vm1327_vm1, %v1237_v62  ;;  %v799_v1 = vadd.f32 %v2267_v36, %v798_v63  ;;  %v879_v2 = vadd.f32 %v2267_v36, %v878_v0  ;;  %v640_v3 = vpop.f32.mrf.mxu0  ;;  %v720_v4 = vpop.f32.mrf.mxu1  ;;  %v283_v62 = vld [vmem:[%s2163_s5 + $0x2d0] sm:$0xff] }
  0xd6   : > { %v641_v5 = vadd.f32 %v2267_v36, %v640_v3  ;;  %v721_v6 = vadd.f32 %v2267_v36, %v720_v4  ;;  %v316_v3 = vld [vmem:[%s2163_s5 + $0x3d8] sm:$0xff] }
  0xd7   : > { %vm1013_vm14 = vcmp.gt.f32.partialorder %v799_v1, 0.0  ;;  %v1141_v7 = vmul.f32 0.2, %v799_v1  ;;  %vm1045_vm15 = vcmp.gt.f32.partialorder %v879_v2, 0.0  ;;  %v1173_v8 = vmul.f32 0.2, %v879_v2 }
  0xd8   : > { %vm950_vm2 = vcmp.gt.f32.partialorder %v641_v5, 0.0  ;;  %v1078_v11 = vmul.f32 0.2, %v641_v5  ;;  %vm982_vm3 = vcmp.gt.f32.partialorder %v721_v6, 0.0  ;;  %v1110_v12 = vmul.f32 0.2, %v721_v6 }
  0xd9   : > { %v1269_v13 = vsel %vm1013_vm14, %v799_v1, %v1141_v7  ;;  %v1301_v14 = vsel %vm1045_vm15, %v879_v2, %v1173_v8  ;;  %v284_v1 = vld [vmem:[%s2163_s5 + $0x2d8] sm:$0xff]  ;;  %v315_v2 = vld [vmem:[%s2163_s5 + $0x3d0] sm:$0xff]  ;;  %v350_v7 = vpack.c.bf16 %v252_v61, %v251_v60 }
  0xda   : > { %1398 = vst.msk [vmem:[%s2284_s12 + $0x230] sm:$0xff] %vm1327_vm1, %v1269_v13  ;;  %v1206_v18 = vsel %vm950_vm2, %v641_v5, %v1078_v11  ;;  %v1238_v19 = vsel %vm982_vm3, %v721_v6, %v1110_v12  ;;  %v334_v6 = vpack.c.bf16 %v220_v55, %v219_v54  ;;  %v366_v12 = vpack.c.bf16 %v284_v1, %v283_v62 }
  0xdb   : > { %1430 = vst.msk [vmem:[%s2284_s12 + $0x330] sm:$0xff] %vm1327_vm1, %v1301_v14  ;;  %v382_v13 = vpack.c.bf16 %v316_v3, %v315_v2 }
  0xdc   : > { %1335 = vst.msk [vmem:[%s2284_s12 + $0x38] sm:$0xff] %vm1327_vm1, %v1206_v18  ;;  %v800_v23 = vpop.f32.mrf.mxu2  ;;  %v880_v24 = vpop.f32.mrf.mxu3 }
  0xdd   : > { %1367 = vst.msk [vmem:[%s2284_s12 + $0x138] sm:$0xff] %vm1327_vm1, %v1238_v19  ;;  %v801_v27 = vadd.f32 %v2267_v36, %v800_v23  ;;  %v881_v28 = vadd.f32 %v2267_v36, %v880_v24  ;;  %v643_v29 = vpop.f32.mrf.mxu0  ;;  %v723_v30 = vpop.f32.mrf.mxu1 }
  0xde   : > { %v644_v33 = vadd.f32 %v2267_v36, %v643_v29  ;;  %v724_v34 = vadd.f32 %v2267_v36, %v723_v30 }
  0xdf   : > { %vm1014_vm4 = vcmp.gt.f32.partialorder %v801_v27, 0.0  ;;  %v1142_v35 = vmul.f32 0.2, %v801_v27  ;;  %vm1046_vm5 = vcmp.gt.f32.partialorder %v881_v28, 0.0  ;;  %v1174_v37 = vmul.f32 0.2, %v881_v28 }
  0xe0   : > { %vm951_vm6 = vcmp.gt.f32.partialorder %v644_v33, 0.0  ;;  %v1079_v38 = vmul.f32 0.2, %v644_v33  ;;  %vm983_vm7 = vcmp.gt.f32.partialorder %v724_v34, 0.0  ;;  %v1111_v39 = vmul.f32 0.2, %v724_v34  ;;  %1831 = vmatmul.msk.bf16.gmra.mxu0 %vm421_vm0, %v333_v25  ;;  %1847 = vmatmul.msk.bf16.gmra.mxu1 %vm421_vm0, %v349_v26 }
  0xe1   : > { %v1270_v40 = vsel %vm1014_vm4, %v801_v27, %v1142_v35  ;;  %v1302_v41 = vsel %vm1046_vm5, %v881_v28, %v1174_v37  ;;  %1863 = vmatmul.msk.bf16.gmra.mxu2 %vm421_vm0, %v365_v31  ;;  %1879 = vmatmul.msk.bf16.gmra.mxu3 %vm421_vm0, %v381_v32  ;;  %v222_v35 = vld [vmem:[%s2163_s5 + $0xe8] sm:$0xff] }
  0xe2   : > { %1399 = vst.msk [vmem:[%s2284_s12 + $0x238] sm:$0xff] %vm1327_vm1, %v1270_v40  ;;  %v1207_v42 = vsel %vm951_vm6, %v644_v33, %v1079_v38  ;;  %v1239_v43 = vsel %vm983_vm7, %v724_v34, %v1111_v39  ;;  %v221_v34 = vld [vmem:[%s2163_s5 + $0xe0] sm:$0xff] }
  0xe3   : > { %1431 = vst.msk [vmem:[%s2284_s12 + $0x338] sm:$0xff] %vm1327_vm1, %v1302_v41  ;;  %v253_v41 = vld [vmem:[%s2163_s5 + $0x1e0] sm:$0xff] }
  0xe4   : > { %1336 = vst.msk [vmem:[%s2284_s12 + $0x40] sm:$0xff] %vm1327_vm1, %v1207_v42  ;;  %v803_v44 = vpop.f32.mrf.mxu2  ;;  %v883_v45 = vpop.f32.mrf.mxu3  ;;  %v254_v42 = vld [vmem:[%s2163_s5 + $0x1e8] sm:$0xff] }
  0xe5   : > { %1368 = vst.msk [vmem:[%s2284_s12 + $0x140] sm:$0xff] %vm1327_vm1, %v1239_v43  ;;  %v804_v46 = vadd.f32 %v2267_v36, %v803_v44  ;;  %v884_v47 = vadd.f32 %v2267_v36, %v883_v45  ;;  %v645_v48 = vpop.f32.mrf.mxu0  ;;  %v725_v49 = vpop.f32.mrf.mxu1  ;;  %v285_v43 = vld [vmem:[%s2163_s5 + $0x2e0] sm:$0xff] }
  0xe6   : > { %v646_v50 = vadd.f32 %v2267_v36, %v645_v48  ;;  %v726_v51 = vadd.f32 %v2267_v36, %v725_v49  ;;  %v318_v48 = vld [vmem:[%s2163_s5 + $0x3e8] sm:$0xff] }
  0xe7   : > { %vm1015_vm8 = vcmp.gt.f32.partialorder %v804_v46, 0.0  ;;  %v1143_v52 = vmul.f32 0.2, %v804_v46  ;;  %vm1047_vm9 = vcmp.gt.f32.partialorder %v884_v47, 0.0  ;;  %v1175_v53 = vmul.f32 0.2, %v884_v47 }
  0xe8   : > { %vm952_vm10 = vcmp.gt.f32.partialorder %v646_v50, 0.0  ;;  %v1080_v56 = vmul.f32 0.2, %v646_v50  ;;  %vm984_vm11 = vcmp.gt.f32.partialorder %v726_v51, 0.0  ;;  %v1112_v57 = vmul.f32 0.2, %v726_v51 }
  0xe9   : > { %v1271_v58 = vsel %vm1015_vm8, %v804_v46, %v1143_v52  ;;  %v1303_v59 = vsel %vm1047_vm9, %v884_v47, %v1175_v53  ;;  %v286_v46 = vld [vmem:[%s2163_s5 + $0x2e8] sm:$0xff]  ;;  %v317_v47 = vld [vmem:[%s2163_s5 + $0x3e0] sm:$0xff]  ;;  %v351_v52 = vpack.c.bf16 %v254_v42, %v253_v41 }
  0xea   : > { %1400 = vst.msk [vmem:[%s2284_s12 + $0x240] sm:$0xff] %vm1327_vm1, %v1271_v58  ;;  %v1208_v63 = vsel %vm952_vm10, %v646_v50, %v1080_v56  ;;  %v1240_v0 = vsel %vm984_vm11, %v726_v51, %v1112_v57  ;;  %v335_v51 = vpack.c.bf16 %v222_v35, %v221_v34  ;;  %v367_v57 = vpack.c.bf16 %v286_v46, %v285_v43 }
  0xeb   : > { %1432 = vst.msk [vmem:[%s2284_s12 + $0x340] sm:$0xff] %vm1327_vm1, %v1303_v59  ;;  %v383_v58 = vpack.c.bf16 %v318_v48, %v317_v47 }
  0xec   : > { %1337 = vst.msk [vmem:[%s2284_s12 + $0x48] sm:$0xff] %vm1327_vm1, %v1208_v63  ;;  %v805_v4 = vpop.f32.mrf.mxu2  ;;  %v885_v5 = vpop.f32.mrf.mxu3 }
  0xed   : > { %1369 = vst.msk [vmem:[%s2284_s12 + $0x148] sm:$0xff] %vm1327_vm1, %v1240_v0  ;;  %v806_v8 = vadd.f32 %v2267_v36, %v805_v4  ;;  %v886_v9 = vadd.f32 %v2267_v36, %v885_v5  ;;  %v648_v10 = vpop.f32.mrf.mxu0  ;;  %v728_v11 = vpop.f32.mrf.mxu1 }
  0xee   : > { %v649_v14 = vadd.f32 %v2267_v36, %v648_v10  ;;  %v729_v15 = vadd.f32 %v2267_v36, %v728_v11 }
  0xef   : > { %vm1016_vm12 = vcmp.gt.f32.partialorder %v806_v8, 0.0  ;;  %v1144_v16 = vmul.f32 0.2, %v806_v8  ;;  %vm1048_vm13 = vcmp.gt.f32.partialorder %v886_v9, 0.0  ;;  %v1176_v17 = vmul.f32 0.2, %v886_v9 }
  0xf0   : > { %vm953_vm14 = vcmp.gt.f32.partialorder %v649_v14, 0.0  ;;  %v1081_v18 = vmul.f32 0.2, %v649_v14  ;;  %vm985_vm15 = vcmp.gt.f32.partialorder %v729_v15, 0.0  ;;  %v1113_v19 = vmul.f32 0.2, %v729_v15  ;;  %1832 = vmatmul.msk.bf16.gmra.mxu0 %vm421_vm0, %v334_v6  ;;  %1848 = vmatmul.msk.bf16.gmra.mxu1 %vm421_vm0, %v350_v7 }
  0xf1   : > { %v1272_v20 = vsel %vm1016_vm12, %v806_v8, %v1144_v16  ;;  %v1304_v21 = vsel %vm1048_vm13, %v886_v9, %v1176_v17  ;;  %1864 = vmatmul.msk.bf16.gmra.mxu2 %vm421_vm0, %v366_v12  ;;  %1880 = vmatmul.msk.bf16.gmra.mxu3 %vm421_vm0, %v382_v13  ;;  %v224_v16 = vld [vmem:[%s2163_s5 + $0xf8] sm:$0xff] }
  0xf2   : > { %1401 = vst.msk [vmem:[%s2284_s12 + $0x248] sm:$0xff] %vm1327_vm1, %v1272_v20  ;;  %v1209_v22 = vsel %vm953_vm14, %v649_v14, %v1081_v18  ;;  %v1241_v23 = vsel %vm985_vm15, %v729_v15, %v1113_v19  ;;  %v223_v15 = vld [vmem:[%s2163_s5 + $0xf0] sm:$0xff] }
  0xf3   : > { %1433 = vst.msk [vmem:[%s2284_s12 + $0x348] sm:$0xff] %vm1327_vm1, %v1304_v21  ;;  %v255_v21 = vld [vmem:[%s2163_s5 + $0x1f0] sm:$0xff] }
  0xf4   : > { %1338 = vst.msk [vmem:[%s2284_s12 + $0x50] sm:$0xff] %vm1327_vm1, %v1209_v22  ;;  %v808_v24 = vpop.f32.mrf.mxu2  ;;  %v888_v25 = vpop.f32.mrf.mxu3  ;;  %v256_v22 = vld [vmem:[%s2163_s5 + $0x1f8] sm:$0xff] }
  0xf5   : > { %1370 = vst.msk [vmem:[%s2284_s12 + $0x150] sm:$0xff] %vm1327_vm1, %v1241_v23  ;;  %v809_v26 = vadd.f32 %v2267_v36, %v808_v24  ;;  %v889_v27 = vadd.f32 %v2267_v36, %v888_v25  ;;  %v650_v28 = vpop.f32.mrf.mxu0  ;;  %v730_v29 = vpop.f32.mrf.mxu1  ;;  %v287_v23 = vld [vmem:[%s2163_s5 + $0x2f0] sm:$0xff] }
  0xf6   : > { %v651_v30 = vadd.f32 %v2267_v36, %v650_v28  ;;  %v731_v31 = vadd.f32 %v2267_v36, %v730_v29  ;;  %v320_v28 = vld [vmem:[%s2163_s5 + $0x3f8] sm:$0xff] }
  0xf7   : > { %vm1017_vm2 = vcmp.gt.f32.partialorder %v809_v26, 0.0  ;;  %v1145_v32 = vmul.f32 0.2, %v809_v26  ;;  %vm1049_vm3 = vcmp.gt.f32.partialorder %v889_v27, 0.0  ;;  %v1177_v33 = vmul.f32 0.2, %v889_v27 }
  0xf8   : > { %vm954_vm4 = vcmp.gt.f32.partialorder %v651_v30, 0.0  ;;  %v1082_v37 = vmul.f32 0.2, %v651_v30  ;;  %vm986_vm5 = vcmp.gt.f32.partialorder %v731_v31, 0.0  ;;  %v1114_v38 = vmul.f32 0.2, %v731_v31 }
  0xf9   : > { %v1273_v39 = vsel %vm1017_vm2, %v809_v26, %v1145_v32  ;;  %v1305_v40 = vsel %vm1049_vm3, %v889_v27, %v1177_v33  ;;  %v288_v26 = vld [vmem:[%s2163_s5 + $0x2f8] sm:$0xff]  ;;  %v319_v27 = vld [vmem:[%s2163_s5 + $0x3f0] sm:$0xff]  ;;  %v352_v32 = vpack.c.bf16 %v256_v22, %v255_v21 }
  0xfa   : > { %1402 = vst.msk [vmem:[%s2284_s12 + $0x250] sm:$0xff] %vm1327_vm1, %v1273_v39  ;;  %v1210_v44 = vsel %vm954_vm4, %v651_v30, %v1082_v37  ;;  %v1242_v45 = vsel %vm986_vm5, %v731_v31, %v1114_v38  ;;  %v336_v31 = vpack.c.bf16 %v224_v16, %v223_v15  ;;  %v368_v38 = vpack.c.bf16 %v288_v26, %v287_v23 }
  0xfb   : > { %1434 = vst.msk [vmem:[%s2284_s12 + $0x350] sm:$0xff] %vm1327_vm1, %v1305_v40  ;;  %v384_v39 = vpack.c.bf16 %v320_v28, %v319_v27 }
  0xfc   : > { %1339 = vst.msk [vmem:[%s2284_s12 + $0x58] sm:$0xff] %vm1327_vm1, %v1210_v44  ;;  %v810_v49 = vpop.f32.mrf.mxu2  ;;  %v890_v50 = vpop.f32.mrf.mxu3 }
  0xfd   : > { %1371 = vst.msk [vmem:[%s2284_s12 + $0x158] sm:$0xff] %vm1327_vm1, %v1242_v45  ;;  %v811_v53 = vadd.f32 %v2267_v36, %v810_v49  ;;  %v891_v54 = vadd.f32 %v2267_v36, %v890_v50  ;;  %v653_v55 = vpop.f32.mrf.mxu0  ;;  %v733_v56 = vpop.f32.mrf.mxu1 }
  0xfe   : > { %v654_v59 = vadd.f32 %v2267_v36, %v653_v55  ;;  %v734_v60 = vadd.f32 %v2267_v36, %v733_v56 }
  0xff   : > { %vm1018_vm6 = vcmp.gt.f32.partialorder %v811_v53, 0.0  ;;  %v1146_v61 = vmul.f32 0.2, %v811_v53  ;;  %vm1050_vm7 = vcmp.gt.f32.partialorder %v891_v54, 0.0  ;;  %v1178_v62 = vmul.f32 0.2, %v891_v54 }
 0x100   : > { %vm955_vm8 = vcmp.gt.f32.partialorder %v654_v59, 0.0  ;;  %v1083_v63 = vmul.f32 0.2, %v654_v59  ;;  %vm987_vm9 = vcmp.gt.f32.partialorder %v734_v60, 0.0  ;;  %v1115_v0 = vmul.f32 0.2, %v734_v60  ;;  %1833 = vmatmul.msk.bf16.gmra.mxu0 %vm421_vm0, %v335_v51  ;;  %1849 = vmatmul.msk.bf16.gmra.mxu1 %vm421_vm0, %v351_v52 }
 0x101   : > { %v1274_v1 = vsel %vm1018_vm6, %v811_v53, %v1146_v61  ;;  %v1306_v2 = vsel %vm1050_vm7, %v891_v54, %v1178_v62  ;;  %1865 = vmatmul.msk.bf16.gmra.mxu2 %vm421_vm0, %v367_v57  ;;  %1881 = vmatmul.msk.bf16.gmra.mxu3 %vm421_vm0, %v383_v58 }
 0x102   : > { %1403 = vst.msk [vmem:[%s2284_s12 + $0x258] sm:$0xff] %vm1327_vm1, %v1274_v1  ;;  %v1211_v3 = vsel %vm955_vm8, %v654_v59, %v1083_v63  ;;  %v1243_v4 = vsel %vm987_vm9, %v734_v60, %v1115_v0 }
 0x103   : > { %1435 = vst.msk [vmem:[%s2284_s12 + $0x358] sm:$0xff] %vm1327_vm1, %v1306_v2 }
 0x104   : > { %1340 = vst.msk [vmem:[%s2284_s12 + $0x60] sm:$0xff] %vm1327_vm1, %v1211_v3  ;;  %v813_v5 = vpop.f32.mrf.mxu2  ;;  %v893_v6 = vpop.f32.mrf.mxu3 }
 0x105   : > { %1372 = vst.msk [vmem:[%s2284_s12 + $0x160] sm:$0xff] %vm1327_vm1, %v1243_v4  ;;  %v814_v7 = vadd.f32 %v2267_v36, %v813_v5  ;;  %v894_v8 = vadd.f32 %v2267_v36, %v893_v6  ;;  %v655_v9 = vpop.f32.mrf.mxu0  ;;  %v735_v10 = vpop.f32.mrf.mxu1 }
 0x106   : > { %v656_v11 = vadd.f32 %v2267_v36, %v655_v9  ;;  %v736_v12 = vadd.f32 %v2267_v36, %v735_v10  ;;  %v2560_v9 = vld [vmem:[%s2901_s2] ss:$0 sm:$0xff] }
 0x107   : > { %vm1019_vm10 = vcmp.gt.f32.partialorder %v814_v7, 0.0  ;;  %v1147_v13 = vmul.f32 0.2, %v814_v7  ;;  %vm1051_vm11 = vcmp.gt.f32.partialorder %v894_v8, 0.0  ;;  %v1179_v14 = vmul.f32 0.2, %v894_v8 }
 0x108   : > { %vm956_vm12 = vcmp.gt.f32.partialorder %v656_v11, 0.0  ;;  %v1084_v17 = vmul.f32 0.2, %v656_v11  ;;  %vm988_vm13 = vcmp.gt.f32.partialorder %v736_v12, 0.0  ;;  %v1116_v18 = vmul.f32 0.2, %v736_v12 }
 0x109   : > { %v1275_v19 = vsel %vm1019_vm10, %v814_v7, %v1147_v13  ;;  %v1307_v20 = vsel %vm1051_vm11, %v894_v8, %v1179_v14 }
 0x10a   : > { %1404 = vst.msk [vmem:[%s2284_s12 + $0x260] sm:$0xff] %vm1327_vm1, %v1275_v19  ;;  %v1212_v24 = vsel %vm956_vm12, %v656_v11, %v1084_v17  ;;  %v1244_v25 = vsel %vm988_vm13, %v736_v12, %v1116_v18 }
 0x10b   : > { %1436 = vst.msk [vmem:[%s2284_s12 + $0x360] sm:$0xff] %vm1327_vm1, %v1307_v20 }
 0x10c   : > { %1341 = vst.msk [vmem:[%s2284_s12 + $0x68] sm:$0xff] %vm1327_vm1, %v1212_v24  ;;  %v815_v29 = vpop.f32.mrf.mxu2  ;;  %v895_v30 = vpop.f32.mrf.mxu3 }
 0x10d   : > { %1373 = vst.msk [vmem:[%s2284_s12 + $0x168] sm:$0xff] %vm1327_vm1, %v1244_v25  ;;  %v816_v33 = vadd.f32 %v2267_v36, %v815_v29  ;;  %v896_v34 = vadd.f32 %v2267_v36, %v895_v30  ;;  %v658_v35 = vpop.f32.mrf.mxu0  ;;  %v738_v37 = vpop.f32.mrf.mxu1 }
 0x10e   : > { %v659_v40 = vadd.f32 %v2267_v36, %v658_v35  ;;  %v739_v41 = vadd.f32 %v2267_v36, %v738_v37 }
 0x10f   : > { %vm1020_vm14 = vcmp.gt.f32.partialorder %v816_v33, 0.0  ;;  %v1148_v42 = vmul.f32 0.2, %v816_v33  ;;  %vm1052_vm15 = vcmp.gt.f32.partialorder %v896_v34, 0.0  ;;  %v1180_v43 = vmul.f32 0.2, %v896_v34 }
 0x110   : > { %vm957_vm2 = vcmp.gt.f32.partialorder %v659_v40, 0.0  ;;  %v1085_v44 = vmul.f32 0.2, %v659_v40  ;;  %vm989_vm3 = vcmp.gt.f32.partialorder %v739_v41, 0.0  ;;  %v1117_v45 = vmul.f32 0.2, %v739_v41  ;;  %1834 = vmatmul.msk.bf16.gmra.mxu0 %vm421_vm0, %v336_v31  ;;  %1850 = vmatmul.msk.bf16.gmra.mxu1 %vm421_vm0, %v352_v32 }
 0x111   : > { %v1276_v46 = vsel %vm1020_vm14, %v816_v33, %v1148_v42  ;;  %v1308_v47 = vsel %vm1052_vm15, %v896_v34, %v1180_v43  ;;  %1866 = vmatmul.msk.bf16.gmra.mxu2 %vm421_vm0, %v368_v38  ;;  %1882 = vmatmul.msk.bf16.gmra.mxu3 %vm421_vm0, %v384_v39 }
 0x112   : > { %1405 = vst.msk [vmem:[%s2284_s12 + $0x268] sm:$0xff] %vm1327_vm1, %v1276_v46  ;;  %v1213_v48 = vsel %vm957_vm2, %v659_v40, %v1085_v44  ;;  %v1245_v49 = vsel %vm989_vm3, %v739_v41, %v1117_v45 }
 0x113   : > { %1437 = vst.msk [vmem:[%s2284_s12 + $0x368] sm:$0xff] %vm1327_vm1, %v1308_v47 }
 0x114   : > { %1342 = vst.msk [vmem:[%s2284_s12 + $0x70] sm:$0xff] %vm1327_vm1, %v1213_v48  ;;  %v818_v50 = vpop.f32.mrf.mxu2  ;;  %v898_v51 = vpop.f32.mrf.mxu3 }
 0x115   : > { %1374 = vst.msk [vmem:[%s2284_s12 + $0x170] sm:$0xff] %vm1327_vm1, %v1245_v49  ;;  %v819_v52 = vadd.f32 %v2267_v36, %v818_v50  ;;  %v899_v53 = vadd.f32 %v2267_v36, %v898_v51  ;;  %v660_v54 = vpop.f32.mrf.mxu0  ;;  %v740_v55 = vpop.f32.mrf.mxu1 }
 0x116   : > { %v661_v56 = vadd.f32 %v2267_v36, %v660_v54  ;;  %v741_v57 = vadd.f32 %v2267_v36, %v740_v55 }
 0x117   : > { %vm1021_vm0 = vcmp.gt.f32.partialorder %v819_v52, 0.0  ;;  %v1149_v58 = vmul.f32 0.2, %v819_v52  ;;  %vm1053_vm4 = vcmp.gt.f32.partialorder %v899_v53, 0.0  ;;  %v1181_v59 = vmul.f32 0.2, %v899_v53 }
 0x118   : > { %vm958_vm5 = vcmp.gt.f32.partialorder %v661_v56, 0.0  ;;  %v1086_v60 = vmul.f32 0.2, %v661_v56  ;;  %vm990_vm6 = vcmp.gt.f32.partialorder %v741_v57, 0.0  ;;  %v1118_v61 = vmul.f32 0.2, %v741_v57 }
 0x119   : > { %v1277_v62 = vsel %vm1021_vm0, %v819_v52, %v1149_v58  ;;  %v1309_v63 = vsel %vm1053_vm4, %v899_v53, %v1181_v59 }
 0x11a   : > { %1406 = vst.msk [vmem:[%s2284_s12 + $0x270] sm:$0xff] %vm1327_vm1, %v1277_v62  ;;  %v1214_v0 = vsel %vm958_vm5, %v661_v56, %v1086_v60  ;;  %v1246_v1 = vsel %vm990_vm6, %v741_v57, %v1118_v61 }
 0x11b   : > { %1438 = vst.msk [vmem:[%s2284_s12 + $0x370] sm:$0xff] %vm1327_vm1, %v1309_v63 }
 0x11c   : > { %1343 = vst.msk [vmem:[%s2284_s12 + $0x78] sm:$0xff] %vm1327_vm1, %v1214_v0  ;;  %v820_v2 = vpop.f32.mrf.mxu2  ;;  %v900_v3 = vpop.f32.mrf.mxu3 }
 0x11d   : > { %1375 = vst.msk [vmem:[%s2284_s12 + $0x178] sm:$0xff] %vm1327_vm1, %v1246_v1  ;;  %v821_v4 = vadd.f32 %v2267_v36, %v820_v2  ;;  %v901_v5 = vadd.f32 %v2267_v36, %v900_v3  ;;  %v663_v6 = vpop.f32.mrf.mxu0  ;;  %v743_v7 = vpop.f32.mrf.mxu1 }
 0x11e   : > { %v664_v8 = vadd.f32 %v2267_v36, %v663_v6  ;;  %v744_v10 = vadd.f32 %v2560_v9, %v743_v7 }
 0x11f   : > { %vm1022_vm7 = vcmp.gt.f32.partialorder %v821_v4, 0.0  ;;  %v1150_v11 = vmul.f32 0.2, %v821_v4  ;;  %vm1054_vm8 = vcmp.gt.f32.partialorder %v901_v5, 0.0  ;;  %v1182_v12 = vmul.f32 0.2, %v901_v5 }
 0x120   : > { %vm959_vm9 = vcmp.gt.f32.partialorder %v664_v8, 0.0  ;;  %v1087_v13 = vmul.f32 0.2, %v664_v8  ;;  %vm991_vm10 = vcmp.gt.f32.partialorder %v744_v10, 0.0  ;;  %v1119_v14 = vmul.f32 0.2, %v744_v10 }
 0x121   : > { %v1278_v15 = vsel %vm1022_vm7, %v821_v4, %v1150_v11  ;;  %v1310_v36 = vsel %vm1054_vm8, %v901_v5, %v1182_v12 }
 0x122   : > { %1407 = vst.msk [vmem:[%s2284_s12 + $0x278] sm:$0xff] %vm1327_vm1, %v1278_v15  ;;  %v1215_v16 = vsel %vm959_vm9, %v664_v8, %v1087_v13  ;;  %v1247_v17 = vsel %vm991_vm10, %v744_v10, %v1119_v14 }
 0x123   : > { %1439 = vst.msk [vmem:[%s2284_s12 + $0x378] sm:$0xff] %vm1327_vm1, %v1310_v36 }
 0x124   : > { %1344 = vst.msk [vmem:[%s2284_s12 + $0x80] sm:$0xff] %vm1327_vm1, %v1215_v16  ;;  %v823_v18 = vpop.f32.mrf.mxu2  ;;  %v903_v19 = vpop.f32.mrf.mxu3 }
 0x125   : > { %1376 = vst.msk [vmem:[%s2284_s12 + $0x180] sm:$0xff] %vm1327_vm1, %v1247_v17  ;;  %v824_v20 = vadd.f32 %v2560_v9, %v823_v18  ;;  %v904_v21 = vadd.f32 %v2560_v9, %v903_v19  ;;  %v665_v22 = vpop.f32.mrf.mxu0  ;;  %v745_v23 = vpop.f32.mrf.mxu1 }
 0x126   : > { %v666_v24 = vadd.f32 %v2560_v9, %v665_v22  ;;  %v746_v25 = vadd.f32 %v2560_v9, %v745_v23 }
 0x127   : > { %vm1023_vm11 = vcmp.gt.f32.partialorder %v824_v20, 0.0  ;;  %v1151_v26 = vmul.f32 0.2, %v824_v20  ;;  %vm1055_vm12 = vcmp.gt.f32.partialorder %v904_v21, 0.0  ;;  %v1183_v27 = vmul.f32 0.2, %v904_v21 }
 0x128   : > { %vm960_vm13 = vcmp.gt.f32.partialorder %v666_v24, 0.0  ;;  %v1088_v28 = vmul.f32 0.2, %v666_v24  ;;  %vm992_vm14 = vcmp.gt.f32.partialorder %v746_v25, 0.0  ;;  %v1120_v29 = vmul.f32 0.2, %v746_v25 }
 0x129   : > { %v1279_v30 = vsel %vm1023_vm11, %v824_v20, %v1151_v26  ;;  %v1311_v31 = vsel %vm1055_vm12, %v904_v21, %v1183_v27 }
 0x12a   : > { %1408 = vst.msk [vmem:[%s2284_s12 + $0x280] sm:$0xff] %vm1327_vm1, %v1279_v30  ;;  %v1216_v32 = vsel %vm960_vm13, %v666_v24, %v1088_v28  ;;  %v1248_v33 = vsel %vm992_vm14, %v746_v25, %v1120_v29 }
 0x12b   : > { %1440 = vst.msk [vmem:[%s2284_s12 + $0x380] sm:$0xff] %vm1327_vm1, %v1311_v31 }
 0x12c   : > { %1345 = vst.msk [vmem:[%s2284_s12 + $0x88] sm:$0xff] %vm1327_vm1, %v1216_v32  ;;  %v825_v34 = vpop.f32.mrf.mxu2  ;;  %v905_v35 = vpop.f32.mrf.mxu3 }
 0x12d   : > { %1377 = vst.msk [vmem:[%s2284_s12 + $0x188] sm:$0xff] %vm1327_vm1, %v1248_v33  ;;  %v826_v37 = vadd.f32 %v2560_v9, %v825_v34  ;;  %v906_v38 = vadd.f32 %v2560_v9, %v905_v35  ;;  %v668_v39 = vpop.f32.mrf.mxu0  ;;  %v748_v40 = vpop.f32.mrf.mxu1 }
 0x12e   : > { %v669_v41 = vadd.f32 %v2560_v9, %v668_v39  ;;  %v749_v42 = vadd.f32 %v2560_v9, %v748_v40 }
 0x12f   : > { %vm1024_vm15 = vcmp.gt.f32.partialorder %v826_v37, 0.0  ;;  %v1152_v43 = vmul.f32 0.2, %v826_v37  ;;  %vm1056_vm2 = vcmp.gt.f32.partialorder %v906_v38, 0.0  ;;  %v1184_v44 = vmul.f32 0.2, %v906_v38 }
 0x130   : > { %vm961_vm3 = vcmp.gt.f32.partialorder %v669_v41, 0.0  ;;  %v1089_v45 = vmul.f32 0.2, %v669_v41  ;;  %vm993_vm0 = vcmp.gt.f32.partialorder %v749_v42, 0.0  ;;  %v1121_v46 = vmul.f32 0.2, %v749_v42 }
 0x131   : > { %v1280_v47 = vsel %vm1024_vm15, %v826_v37, %v1152_v43  ;;  %v1312_v48 = vsel %vm1056_vm2, %v906_v38, %v1184_v44 }
 0x132   : > { %1409 = vst.msk [vmem:[%s2284_s12 + $0x288] sm:$0xff] %vm1327_vm1, %v1280_v47  ;;  %v1217_v49 = vsel %vm961_vm3, %v669_v41, %v1089_v45  ;;  %v1249_v50 = vsel %vm993_vm0, %v749_v42, %v1121_v46 }
 0x133   : > { %1441 = vst.msk [vmem:[%s2284_s12 + $0x388] sm:$0xff] %vm1327_vm1, %v1312_v48 }
 0x134   : > { %1346 = vst.msk [vmem:[%s2284_s12 + $0x90] sm:$0xff] %vm1327_vm1, %v1217_v49  ;;  %v828_v51 = vpop.f32.mrf.mxu2  ;;  %v908_v52 = vpop.f32.mrf.mxu3 }
 0x135   : > { %1378 = vst.msk [vmem:[%s2284_s12 + $0x190] sm:$0xff] %vm1327_vm1, %v1249_v50  ;;  %v829_v53 = vadd.f32 %v2560_v9, %v828_v51  ;;  %v909_v54 = vadd.f32 %v2560_v9, %v908_v52  ;;  %v670_v55 = vpop.f32.mrf.mxu0  ;;  %v750_v56 = vpop.f32.mrf.mxu1 }
 0x136   : > { %v671_v57 = vadd.f32 %v2560_v9, %v670_v55  ;;  %v751_v58 = vadd.f32 %v2560_v9, %v750_v56 }
 0x137   : > { %vm1025_vm4 = vcmp.gt.f32.partialorder %v829_v53, 0.0  ;;  %v1153_v59 = vmul.f32 0.2, %v829_v53  ;;  %vm1057_vm5 = vcmp.gt.f32.partialorder %v909_v54, 0.0  ;;  %v1185_v60 = vmul.f32 0.2, %v909_v54 }
 0x138   : > { %vm962_vm6 = vcmp.gt.f32.partialorder %v671_v57, 0.0  ;;  %v1090_v61 = vmul.f32 0.2, %v671_v57  ;;  %vm994_vm7 = vcmp.gt.f32.partialorder %v751_v58, 0.0  ;;  %v1122_v62 = vmul.f32 0.2, %v751_v58 }
 0x139   : > { %v1281_v63 = vsel %vm1025_vm4, %v829_v53, %v1153_v59  ;;  %v1313_v0 = vsel %vm1057_vm5, %v909_v54, %v1185_v60 }
 0x13a   : > { %1410 = vst.msk [vmem:[%s2284_s12 + $0x290] sm:$0xff] %vm1327_vm1, %v1281_v63  ;;  %v1218_v1 = vsel %vm962_vm6, %v671_v57, %v1090_v61  ;;  %v1250_v2 = vsel %vm994_vm7, %v751_v58, %v1122_v62 }
 0x13b   : > { %1442 = vst.msk [vmem:[%s2284_s12 + $0x390] sm:$0xff] %vm1327_vm1, %v1313_v0 }
 0x13c   : > { %1347 = vst.msk [vmem:[%s2284_s12 + $0x98] sm:$0xff] %vm1327_vm1, %v1218_v1  ;;  %v830_v3 = vpop.f32.mrf.mxu2  ;;  %v910_v4 = vpop.f32.mrf.mxu3 }
 0x13d   : > { %1379 = vst.msk [vmem:[%s2284_s12 + $0x198] sm:$0xff] %vm1327_vm1, %v1250_v2  ;;  %v831_v5 = vadd.f32 %v2560_v9, %v830_v3  ;;  %v911_v6 = vadd.f32 %v2560_v9, %v910_v4  ;;  %v673_v7 = vpop.f32.mrf.mxu0  ;;  %v753_v8 = vpop.f32.mrf.mxu1 }
 0x13e   : > { %v674_v10 = vadd.f32 %v2560_v9, %v673_v7  ;;  %v754_v11 = vadd.f32 %v2560_v9, %v753_v8 }
 0x13f   : > { %vm1026_vm8 = vcmp.gt.f32.partialorder %v831_v5, 0.0  ;;  %v1154_v12 = vmul.f32 0.2, %v831_v5  ;;  %vm1058_vm9 = vcmp.gt.f32.partialorder %v911_v6, 0.0  ;;  %v1186_v13 = vmul.f32 0.2, %v911_v6 }
 0x140   : > { %vm963_vm10 = vcmp.gt.f32.partialorder %v674_v10, 0.0  ;;  %v1091_v14 = vmul.f32 0.2, %v674_v10  ;;  %vm995_vm11 = vcmp.gt.f32.partialorder %v754_v11, 0.0  ;;  %v1123_v15 = vmul.f32 0.2, %v754_v11 }
 0x141   : > { %v1282_v36 = vsel %vm1026_vm8, %v831_v5, %v1154_v12  ;;  %v1314_v16 = vsel %vm1058_vm9, %v911_v6, %v1186_v13 }
 0x142   : > { %1411 = vst.msk [vmem:[%s2284_s12 + $0x298] sm:$0xff] %vm1327_vm1, %v1282_v36  ;;  %v1219_v17 = vsel %vm963_vm10, %v674_v10, %v1091_v14  ;;  %v1251_v18 = vsel %vm995_vm11, %v754_v11, %v1123_v15 }
 0x143   : > { %1443 = vst.msk [vmem:[%s2284_s12 + $0x398] sm:$0xff] %vm1327_vm1, %v1314_v16 }
 0x144   : > { %1348 = vst.msk [vmem:[%s2284_s12 + $0xa0] sm:$0xff] %vm1327_vm1, %v1219_v17  ;;  %v833_v19 = vpop.f32.mrf.mxu2  ;;  %v913_v20 = vpop.f32.mrf.mxu3 }
 0x145   : > { %1380 = vst.msk [vmem:[%s2284_s12 + $0x1a0] sm:$0xff] %vm1327_vm1, %v1251_v18  ;;  %v834_v21 = vadd.f32 %v2560_v9, %v833_v19  ;;  %v914_v22 = vadd.f32 %v2560_v9, %v913_v20  ;;  %v675_v23 = vpop.f32.mrf.mxu0  ;;  %v755_v24 = vpop.f32.mrf.mxu1 }
 0x146   : > { %v676_v25 = vadd.f32 %v2560_v9, %v675_v23  ;;  %v756_v26 = vadd.f32 %v2560_v9, %v755_v24 }
 0x147   : > { %vm1027_vm12 = vcmp.gt.f32.partialorder %v834_v21, 0.0  ;;  %v1155_v27 = vmul.f32 0.2, %v834_v21  ;;  %vm1059_vm13 = vcmp.gt.f32.partialorder %v914_v22, 0.0  ;;  %v1187_v28 = vmul.f32 0.2, %v914_v22 }
 0x148   : > { %vm964_vm14 = vcmp.gt.f32.partialorder %v676_v25, 0.0  ;;  %v1092_v29 = vmul.f32 0.2, %v676_v25  ;;  %vm996_vm15 = vcmp.gt.f32.partialorder %v756_v26, 0.0  ;;  %v1124_v30 = vmul.f32 0.2, %v756_v26 }
 0x149   : > { %v1283_v31 = vsel %vm1027_vm12, %v834_v21, %v1155_v27  ;;  %v1315_v32 = vsel %vm1059_vm13, %v914_v22, %v1187_v28 }
 0x14a   : > { %1412 = vst.msk [vmem:[%s2284_s12 + $0x2a0] sm:$0xff] %vm1327_vm1, %v1283_v31  ;;  %v1220_v33 = vsel %vm964_vm14, %v676_v25, %v1092_v29  ;;  %v1252_v34 = vsel %vm996_vm15, %v756_v26, %v1124_v30 }
 0x14b   : > { %1444 = vst.msk [vmem:[%s2284_s12 + $0x3a0] sm:$0xff] %vm1327_vm1, %v1315_v32 }
 0x14c   : > { %1349 = vst.msk [vmem:[%s2284_s12 + $0xa8] sm:$0xff] %vm1327_vm1, %v1220_v33  ;;  %v835_v35 = vpop.f32.mrf.mxu2  ;;  %v915_v37 = vpop.f32.mrf.mxu3 }
 0x14d   : > { %1381 = vst.msk [vmem:[%s2284_s12 + $0x1a8] sm:$0xff] %vm1327_vm1, %v1252_v34  ;;  %v836_v38 = vadd.f32 %v2560_v9, %v835_v35  ;;  %v916_v39 = vadd.f32 %v2560_v9, %v915_v37  ;;  %v678_v40 = vpop.f32.mrf.mxu0  ;;  %v758_v41 = vpop.f32.mrf.mxu1 }
 0x14e   : > { %v679_v42 = vadd.f32 %v2560_v9, %v678_v40  ;;  %v759_v43 = vadd.f32 %v2560_v9, %v758_v41 }
 0x14f   : > { %vm1028_vm2 = vcmp.gt.f32.partialorder %v836_v38, 0.0  ;;  %v1156_v44 = vmul.f32 0.2, %v836_v38  ;;  %vm1060_vm3 = vcmp.gt.f32.partialorder %v916_v39, 0.0  ;;  %v1188_v45 = vmul.f32 0.2, %v916_v39 }
 0x150   : > { %vm965_vm0 = vcmp.gt.f32.partialorder %v679_v42, 0.0  ;;  %v1093_v46 = vmul.f32 0.2, %v679_v42  ;;  %vm997_vm4 = vcmp.gt.f32.partialorder %v759_v43, 0.0  ;;  %v1125_v47 = vmul.f32 0.2, %v759_v43 }
 0x151   : > { %v1284_v48 = vsel %vm1028_vm2, %v836_v38, %v1156_v44  ;;  %v1316_v49 = vsel %vm1060_vm3, %v916_v39, %v1188_v45 }
 0x152   : > { %1413 = vst.msk [vmem:[%s2284_s12 + $0x2a8] sm:$0xff] %vm1327_vm1, %v1284_v48  ;;  %v1221_v50 = vsel %vm965_vm0, %v679_v42, %v1093_v46  ;;  %v1253_v51 = vsel %vm997_vm4, %v759_v43, %v1125_v47 }
 0x153   : > { %1445 = vst.msk [vmem:[%s2284_s12 + $0x3a8] sm:$0xff] %vm1327_vm1, %v1316_v49 }
 0x154   : > { %1350 = vst.msk [vmem:[%s2284_s12 + $0xb0] sm:$0xff] %vm1327_vm1, %v1221_v50  ;;  %v838_v52 = vpop.f32.mrf.mxu2  ;;  %v918_v53 = vpop.f32.mrf.mxu3 }
 0x155   : > { %1382 = vst.msk [vmem:[%s2284_s12 + $0x1b0] sm:$0xff] %vm1327_vm1, %v1253_v51  ;;  %v839_v54 = vadd.f32 %v2560_v9, %v838_v52  ;;  %v919_v55 = vadd.f32 %v2560_v9, %v918_v53  ;;  %v680_v56 = vpop.f32.mrf.mxu0  ;;  %v760_v57 = vpop.f32.mrf.mxu1 }
 0x156   : > { %v681_v58 = vadd.f32 %v2560_v9, %v680_v56  ;;  %v761_v59 = vadd.f32 %v2560_v9, %v760_v57 }
 0x157   : > { %vm1029_vm5 = vcmp.gt.f32.partialorder %v839_v54, 0.0  ;;  %v1157_v60 = vmul.f32 0.2, %v839_v54  ;;  %vm1061_vm6 = vcmp.gt.f32.partialorder %v919_v55, 0.0  ;;  %v1189_v61 = vmul.f32 0.2, %v919_v55 }
 0x158   : > { %vm966_vm7 = vcmp.gt.f32.partialorder %v681_v58, 0.0  ;;  %v1094_v62 = vmul.f32 0.2, %v681_v58  ;;  %vm998_vm8 = vcmp.gt.f32.partialorder %v761_v59, 0.0  ;;  %v1126_v63 = vmul.f32 0.2, %v761_v59 }
 0x159   : > { %v1285_v0 = vsel %vm1029_vm5, %v839_v54, %v1157_v60  ;;  %v1317_v1 = vsel %vm1061_vm6, %v919_v55, %v1189_v61 }
 0x15a   : > { %1414 = vst.msk [vmem:[%s2284_s12 + $0x2b0] sm:$0xff] %vm1327_vm1, %v1285_v0  ;;  %v1222_v2 = vsel %vm966_vm7, %v681_v58, %v1094_v62  ;;  %v1254_v3 = vsel %vm998_vm8, %v761_v59, %v1126_v63 }
 0x15b   : > { %1446 = vst.msk [vmem:[%s2284_s12 + $0x3b0] sm:$0xff] %vm1327_vm1, %v1317_v1 }
 0x15c   : > { %1351 = vst.msk [vmem:[%s2284_s12 + $0xb8] sm:$0xff] %vm1327_vm1, %v1222_v2  ;;  %v840_v4 = vpop.f32.mrf.mxu2  ;;  %v920_v5 = vpop.f32.mrf.mxu3 }
 0x15d   : > { %1383 = vst.msk [vmem:[%s2284_s12 + $0x1b8] sm:$0xff] %vm1327_vm1, %v1254_v3  ;;  %v841_v6 = vadd.f32 %v2560_v9, %v840_v4  ;;  %v921_v7 = vadd.f32 %v2560_v9, %v920_v5  ;;  %v683_v8 = vpop.f32.mrf.mxu0  ;;  %v763_v10 = vpop.f32.mrf.mxu1 }
 0x15e   : > { %v684_v11 = vadd.f32 %v2560_v9, %v683_v8  ;;  %v764_v12 = vadd.f32 %v2560_v9, %v763_v10 }
 0x15f   : > { %vm1030_vm9 = vcmp.gt.f32.partialorder %v841_v6, 0.0  ;;  %v1158_v13 = vmul.f32 0.2, %v841_v6  ;;  %vm1062_vm10 = vcmp.gt.f32.partialorder %v921_v7, 0.0  ;;  %v1190_v14 = vmul.f32 0.2, %v921_v7 }
 0x160   : > { %vm967_vm11 = vcmp.gt.f32.partialorder %v684_v11, 0.0  ;;  %v1095_v15 = vmul.f32 0.2, %v684_v11  ;;  %vm999_vm12 = vcmp.gt.f32.partialorder %v764_v12, 0.0  ;;  %v1127_v36 = vmul.f32 0.2, %v764_v12 }
 0x161   : > { %v1286_v16 = vsel %vm1030_vm9, %v841_v6, %v1158_v13  ;;  %v1318_v17 = vsel %vm1062_vm10, %v921_v7, %v1190_v14 }
 0x162   : > { %1415 = vst.msk [vmem:[%s2284_s12 + $0x2b8] sm:$0xff] %vm1327_vm1, %v1286_v16  ;;  %v1223_v18 = vsel %vm967_vm11, %v684_v11, %v1095_v15  ;;  %v1255_v19 = vsel %vm999_vm12, %v764_v12, %v1127_v36 }
 0x163   : > { %1447 = vst.msk [vmem:[%s2284_s12 + $0x3b8] sm:$0xff] %vm1327_vm1, %v1318_v17 }
 0x164   : > { %1352 = vst.msk [vmem:[%s2284_s12 + $0xc0] sm:$0xff] %vm1327_vm1, %v1223_v18  ;;  %v843_v20 = vpop.f32.mrf.mxu2  ;;  %v923_v21 = vpop.f32.mrf.mxu3 }
 0x165   : > { %1384 = vst.msk [vmem:[%s2284_s12 + $0x1c0] sm:$0xff] %vm1327_vm1, %v1255_v19  ;;  %v844_v22 = vadd.f32 %v2560_v9, %v843_v20  ;;  %v924_v23 = vadd.f32 %v2560_v9, %v923_v21  ;;  %v685_v24 = vpop.f32.mrf.mxu0  ;;  %v765_v25 = vpop.f32.mrf.mxu1 }
 0x166   : > { %v686_v26 = vadd.f32 %v2560_v9, %v685_v24  ;;  %v766_v27 = vadd.f32 %v2560_v9, %v765_v25 }
 0x167   : > { %vm1031_vm13 = vcmp.gt.f32.partialorder %v844_v22, 0.0  ;;  %v1159_v28 = vmul.f32 0.2, %v844_v22  ;;  %vm1063_vm14 = vcmp.gt.f32.partialorder %v924_v23, 0.0  ;;  %v1191_v29 = vmul.f32 0.2, %v924_v23 }
 0x168   : > { %vm968_vm15 = vcmp.gt.f32.partialorder %v686_v26, 0.0  ;;  %v1096_v30 = vmul.f32 0.2, %v686_v26  ;;  %vm1000_vm2 = vcmp.gt.f32.partialorder %v766_v27, 0.0  ;;  %v1128_v31 = vmul.f32 0.2, %v766_v27 }
 0x169   : > { %v1287_v32 = vsel %vm1031_vm13, %v844_v22, %v1159_v28  ;;  %v1319_v33 = vsel %vm1063_vm14, %v924_v23, %v1191_v29 }
 0x16a   : > { %1416 = vst.msk [vmem:[%s2284_s12 + $0x2c0] sm:$0xff] %vm1327_vm1, %v1287_v32  ;;  %v1224_v34 = vsel %vm968_vm15, %v686_v26, %v1096_v30  ;;  %v1256_v35 = vsel %vm1000_vm2, %v766_v27, %v1128_v31 }
 0x16b   : > { %1448 = vst.msk [vmem:[%s2284_s12 + $0x3c0] sm:$0xff] %vm1327_vm1, %v1319_v33 }
 0x16c   : > { %1353 = vst.msk [vmem:[%s2284_s12 + $0xc8] sm:$0xff] %vm1327_vm1, %v1224_v34  ;;  %v845_v37 = vpop.f32.mrf.mxu2  ;;  %v925_v38 = vpop.f32.mrf.mxu3 }
 0x16d   : > { %1385 = vst.msk [vmem:[%s2284_s12 + $0x1c8] sm:$0xff] %vm1327_vm1, %v1256_v35  ;;  %v846_v39 = vadd.f32 %v2560_v9, %v845_v37  ;;  %v926_v40 = vadd.f32 %v2560_v9, %v925_v38  ;;  %v688_v41 = vpop.f32.mrf.mxu0  ;;  %v768_v42 = vpop.f32.mrf.mxu1 }
 0x16e   : > { %v689_v43 = vadd.f32 %v2560_v9, %v688_v41  ;;  %v769_v44 = vadd.f32 %v2560_v9, %v768_v42 }
 0x16f   : > { %vm1032_vm3 = vcmp.gt.f32.partialorder %v846_v39, 0.0  ;;  %v1160_v45 = vmul.f32 0.2, %v846_v39  ;;  %vm1064_vm0 = vcmp.gt.f32.partialorder %v926_v40, 0.0  ;;  %v1192_v46 = vmul.f32 0.2, %v926_v40 }
 0x170   : > { %vm969_vm4 = vcmp.gt.f32.partialorder %v689_v43, 0.0  ;;  %v1097_v47 = vmul.f32 0.2, %v689_v43  ;;  %vm1001_vm5 = vcmp.gt.f32.partialorder %v769_v44, 0.0  ;;  %v1129_v48 = vmul.f32 0.2, %v769_v44 }
 0x171   : > { %v1288_v49 = vsel %vm1032_vm3, %v846_v39, %v1160_v45  ;;  %v1320_v50 = vsel %vm1064_vm0, %v926_v40, %v1192_v46 }
 0x172   : > { %1417 = vst.msk [vmem:[%s2284_s12 + $0x2c8] sm:$0xff] %vm1327_vm1, %v1288_v49  ;;  %v1225_v51 = vsel %vm969_vm4, %v689_v43, %v1097_v47  ;;  %v1257_v52 = vsel %vm1001_vm5, %v769_v44, %v1129_v48 }
 0x173   : > { %1449 = vst.msk [vmem:[%s2284_s12 + $0x3c8] sm:$0xff] %vm1327_vm1, %v1320_v50 }
 0x174   : > { %1354 = vst.msk [vmem:[%s2284_s12 + $0xd0] sm:$0xff] %vm1327_vm1, %v1225_v51  ;;  %v848_v53 = vpop.f32.mrf.mxu2  ;;  %v928_v54 = vpop.f32.mrf.mxu3 }
 0x175   : > { %1386 = vst.msk [vmem:[%s2284_s12 + $0x1d0] sm:$0xff] %vm1327_vm1, %v1257_v52  ;;  %v849_v55 = vadd.f32 %v2560_v9, %v848_v53  ;;  %v929_v56 = vadd.f32 %v2560_v9, %v928_v54  ;;  %v690_v57 = vpop.f32.mrf.mxu0  ;;  %v770_v58 = vpop.f32.mrf.mxu1 }
 0x176   : > { %v691_v59 = vadd.f32 %v2560_v9, %v690_v57  ;;  %v771_v60 = vadd.f32 %v2560_v9, %v770_v58 }
 0x177   : > { %vm1033_vm6 = vcmp.gt.f32.partialorder %v849_v55, 0.0  ;;  %v1161_v61 = vmul.f32 0.2, %v849_v55  ;;  %vm1065_vm7 = vcmp.gt.f32.partialorder %v929_v56, 0.0  ;;  %v1193_v62 = vmul.f32 0.2, %v929_v56 }
 0x178   : > { %vm970_vm8 = vcmp.gt.f32.partialorder %v691_v59, 0.0  ;;  %v1098_v63 = vmul.f32 0.2, %v691_v59  ;;  %vm1002_vm9 = vcmp.gt.f32.partialorder %v771_v60, 0.0  ;;  %v1130_v0 = vmul.f32 0.2, %v771_v60 }
 0x179   : > { %v1289_v1 = vsel %vm1033_vm6, %v849_v55, %v1161_v61  ;;  %v1321_v2 = vsel %vm1065_vm7, %v929_v56, %v1193_v62 }
 0x17a   : > { %1418 = vst.msk [vmem:[%s2284_s12 + $0x2d0] sm:$0xff] %vm1327_vm1, %v1289_v1  ;;  %v1226_v3 = vsel %vm970_vm8, %v691_v59, %v1098_v63  ;;  %v1258_v4 = vsel %vm1002_vm9, %v771_v60, %v1130_v0 }
 0x17b   : > { %1450 = vst.msk [vmem:[%s2284_s12 + $0x3d0] sm:$0xff] %vm1327_vm1, %v1321_v2 }
 0x17c   : > { %1355 = vst.msk [vmem:[%s2284_s12 + $0xd8] sm:$0xff] %vm1327_vm1, %v1226_v3  ;;  %v850_v5 = vpop.f32.mrf.mxu2  ;;  %v930_v6 = vpop.f32.mrf.mxu3 }
 0x17d   : > { %1387 = vst.msk [vmem:[%s2284_s12 + $0x1d8] sm:$0xff] %vm1327_vm1, %v1258_v4  ;;  %v851_v7 = vadd.f32 %v2560_v9, %v850_v5  ;;  %v931_v8 = vadd.f32 %v2560_v9, %v930_v6  ;;  %v693_v10 = vpop.f32.mrf.mxu0  ;;  %v773_v11 = vpop.f32.mrf.mxu1 }
 0x17e   : > { %v694_v12 = vadd.f32 %v2560_v9, %v693_v10  ;;  %v774_v13 = vadd.f32 %v2560_v9, %v773_v11 }
 0x17f   : > { %vm1034_vm10 = vcmp.gt.f32.partialorder %v851_v7, 0.0  ;;  %v1162_v14 = vmul.f32 0.2, %v851_v7  ;;  %vm1066_vm11 = vcmp.gt.f32.partialorder %v931_v8, 0.0  ;;  %v1194_v15 = vmul.f32 0.2, %v931_v8 }
 0x180   : > { %vm971_vm12 = vcmp.gt.f32.partialorder %v694_v12, 0.0  ;;  %v1099_v36 = vmul.f32 0.2, %v694_v12  ;;  %vm1003_vm13 = vcmp.gt.f32.partialorder %v774_v13, 0.0  ;;  %v1131_v16 = vmul.f32 0.2, %v774_v13 }
 0x181   : > { %v1290_v17 = vsel %vm1034_vm10, %v851_v7, %v1162_v14  ;;  %v1322_v18 = vsel %vm1066_vm11, %v931_v8, %v1194_v15 }
 0x182   : > { %1419 = vst.msk [vmem:[%s2284_s12 + $0x2d8] sm:$0xff] %vm1327_vm1, %v1290_v17  ;;  %v1227_v19 = vsel %vm971_vm12, %v694_v12, %v1099_v36  ;;  %v1259_v20 = vsel %vm1003_vm13, %v774_v13, %v1131_v16 }
 0x183   : > { %1451 = vst.msk [vmem:[%s2284_s12 + $0x3d8] sm:$0xff] %vm1327_vm1, %v1322_v18 }
 0x184   : > { %1356 = vst.msk [vmem:[%s2284_s12 + $0xe0] sm:$0xff] %vm1327_vm1, %v1227_v19  ;;  %v853_v21 = vpop.f32.mrf.mxu2  ;;  %v933_v22 = vpop.f32.mrf.mxu3 }
 0x185   : > { %1388 = vst.msk [vmem:[%s2284_s12 + $0x1e0] sm:$0xff] %vm1327_vm1, %v1259_v20  ;;  %v854_v23 = vadd.f32 %v2560_v9, %v853_v21  ;;  %v934_v24 = vadd.f32 %v2560_v9, %v933_v22  ;;  %v695_v25 = vpop.f32.mrf.mxu0  ;;  %v775_v26 = vpop.f32.mrf.mxu1 }
 0x186   : > { %v696_v27 = vadd.f32 %v2560_v9, %v695_v25  ;;  %v776_v28 = vadd.f32 %v2560_v9, %v775_v26 }
 0x187   : > { %vm1035_vm14 = vcmp.gt.f32.partialorder %v854_v23, 0.0  ;;  %v1163_v29 = vmul.f32 0.2, %v854_v23  ;;  %vm1067_vm15 = vcmp.gt.f32.partialorder %v934_v24, 0.0  ;;  %v1195_v30 = vmul.f32 0.2, %v934_v24 }
 0x188   : > { %vm972_vm2 = vcmp.gt.f32.partialorder %v696_v27, 0.0  ;;  %v1100_v31 = vmul.f32 0.2, %v696_v27  ;;  %vm1004_vm3 = vcmp.gt.f32.partialorder %v776_v28, 0.0  ;;  %v1132_v32 = vmul.f32 0.2, %v776_v28 }
 0x189   : > { %v1291_v33 = vsel %vm1035_vm14, %v854_v23, %v1163_v29  ;;  %v1323_v34 = vsel %vm1067_vm15, %v934_v24, %v1195_v30 }
 0x18a   : > { %1420 = vst.msk [vmem:[%s2284_s12 + $0x2e0] sm:$0xff] %vm1327_vm1, %v1291_v33  ;;  %v1228_v35 = vsel %vm972_vm2, %v696_v27, %v1100_v31  ;;  %v1260_v37 = vsel %vm1004_vm3, %v776_v28, %v1132_v32 }
 0x18b   : > { %1452 = vst.msk [vmem:[%s2284_s12 + $0x3e0] sm:$0xff] %vm1327_vm1, %v1323_v34 }
 0x18c   : > { %1357 = vst.msk [vmem:[%s2284_s12 + $0xe8] sm:$0xff] %vm1327_vm1, %v1228_v35  ;;  %v855_v38 = vpop.f32.mrf.mxu2  ;;  %v935_v39 = vpop.f32.mrf.mxu3 }
 0x18d   : > { %1389 = vst.msk [vmem:[%s2284_s12 + $0x1e8] sm:$0xff] %vm1327_vm1, %v1260_v37  ;;  %v856_v40 = vadd.f32 %v2560_v9, %v855_v38  ;;  %v936_v41 = vadd.f32 %v2560_v9, %v935_v39  ;;  %v698_v42 = vpop.f32.mrf.mxu0  ;;  %v778_v43 = vpop.f32.mrf.mxu1 }
 0x18e   : > { %v699_v44 = vadd.f32 %v2560_v9, %v698_v42  ;;  %v779_v45 = vadd.f32 %v2560_v9, %v778_v43 }
 0x18f   : > { %vm1036_vm0 = vcmp.gt.f32.partialorder %v856_v40, 0.0  ;;  %v1164_v46 = vmul.f32 0.2, %v856_v40  ;;  %vm1068_vm4 = vcmp.gt.f32.partialorder %v936_v41, 0.0  ;;  %v1196_v47 = vmul.f32 0.2, %v936_v41 }
 0x190   : > { %vm973_vm5 = vcmp.gt.f32.partialorder %v699_v44, 0.0  ;;  %v1101_v48 = vmul.f32 0.2, %v699_v44  ;;  %vm1005_vm6 = vcmp.gt.f32.partialorder %v779_v45, 0.0  ;;  %v1133_v49 = vmul.f32 0.2, %v779_v45 }
 0x191   : > { %v1292_v50 = vsel %vm1036_vm0, %v856_v40, %v1164_v46  ;;  %v1324_v51 = vsel %vm1068_vm4, %v936_v41, %v1196_v47 }
 0x192   : > { %1421 = vst.msk [vmem:[%s2284_s12 + $0x2e8] sm:$0xff] %vm1327_vm1, %v1292_v50  ;;  %v1229_v52 = vsel %vm973_vm5, %v699_v44, %v1101_v48  ;;  %v1261_v53 = vsel %vm1005_vm6, %v779_v45, %v1133_v49 }
 0x193   : > { %1453 = vst.msk [vmem:[%s2284_s12 + $0x3e8] sm:$0xff] %vm1327_vm1, %v1324_v51 }
 0x194   : > { %1358 = vst.msk [vmem:[%s2284_s12 + $0xf0] sm:$0xff] %vm1327_vm1, %v1229_v52  ;;  %v858_v54 = vpop.f32.mrf.mxu2  ;;  %v938_v55 = vpop.f32.mrf.mxu3 }
 0x195   : > { %1390 = vst.msk [vmem:[%s2284_s12 + $0x1f0] sm:$0xff] %vm1327_vm1, %v1261_v53  ;;  %v859_v56 = vadd.f32 %v2560_v9, %v858_v54  ;;  %v939_v57 = vadd.f32 %v2560_v9, %v938_v55  ;;  %v700_v58 = vpop.f32.mrf.mxu0  ;;  %v780_v59 = vpop.f32.mrf.mxu1 }
 0x196   : > { %v701_v60 = vadd.f32 %v2560_v9, %v700_v58  ;;  %v781_v61 = vadd.f32 %v2560_v9, %v780_v59 }
 0x197   : > { %vm1037_vm7 = vcmp.gt.f32.partialorder %v859_v56, 0.0  ;;  %v1165_v62 = vmul.f32 0.2, %v859_v56  ;;  %vm1069_vm8 = vcmp.gt.f32.partialorder %v939_v57, 0.0  ;;  %v1197_v63 = vmul.f32 0.2, %v939_v57 }
 0x198   : > { %vm974_vm9 = vcmp.gt.f32.partialorder %v701_v60, 0.0  ;;  %v1102_v0 = vmul.f32 0.2, %v701_v60  ;;  %vm1006_vm10 = vcmp.gt.f32.partialorder %v781_v61, 0.0  ;;  %v1134_v1 = vmul.f32 0.2, %v781_v61 }
 0x199   : > { %v1293_v2 = vsel %vm1037_vm7, %v859_v56, %v1165_v62  ;;  %v1325_v3 = vsel %vm1069_vm8, %v939_v57, %v1197_v63 }
 0x19a   : > { %1422 = vst.msk [vmem:[%s2284_s12 + $0x2f0] sm:$0xff] %vm1327_vm1, %v1293_v2  ;;  %v1230_v4 = vsel %vm974_vm9, %v701_v60, %v1102_v0  ;;  %v1262_v5 = vsel %vm1006_vm10, %v781_v61, %v1134_v1 }
 0x19b   : > { %1454 = vst.msk [vmem:[%s2284_s12 + $0x3f0] sm:$0xff] %vm1327_vm1, %v1325_v3 }
 0x19c   : > { %1359 = vst.msk [vmem:[%s2284_s12 + $0xf8] sm:$0xff] %vm1327_vm1, %v1230_v4  ;;  %v860_v6 = vpop.f32.mrf.mxu2  ;;  %v940_v7 = vpop.f32.mrf.mxu3 }
 0x19d   : > { %1391 = vst.msk [vmem:[%s2284_s12 + $0x1f8] sm:$0xff] %vm1327_vm1, %v1262_v5  ;;  %v861_v8 = vadd.f32 %v2560_v9, %v860_v6  ;;  %v941_v10 = vadd.f32 %v2560_v9, %v940_v7 }
 0x19f   : > { %vm1038_vm11 = vcmp.gt.f32.partialorder %v861_v8, 0.0  ;;  %v1166_v11 = vmul.f32 0.2, %v861_v8  ;;  %vm1070_vm12 = vcmp.gt.f32.partialorder %v941_v10, 0.0  ;;  %v1198_v12 = vmul.f32 0.2, %v941_v10 }
 0x1a0   : > { %1462 = sbr.rel (!%p2142_p4) target bundleno = 485 (0x1e5), region = 36 }
 0x1a1   : > { %v1294_v13 = vsel %vm1038_vm11, %v861_v8, %v1166_v11  ;;  %v1326_v14 = vsel %vm1070_vm12, %v941_v10, %v1198_v12 }
 0x1a2   : > { %1423 = vst.msk [vmem:[%s2284_s12 + $0x2f8] sm:$0xff] %vm1327_vm1, %v1294_v13 }
 0x1a3   : > { %1455 = vst.msk [vmem:[%s2284_s12 + $0x3f8] sm:$0xff] %vm1327_vm1, %v1326_v14 }
 0x1a5   : > { %s2913_s18 = smov (!%p1465_p8, %s1464_s18), 128 }
 0x1a6   : > { %s1885_s26 = sshll.u32 %s2913_s18, 3 }
 0x1a7   : > { %p1888_p9 = scmp.eq.s32.totalorder %s1885_s26, 0 }
 0x1a8   : > { %s2770_s27 = sshrl.u32 (!%p1888_p9), %s2913_s18, 5 }
 0x1a9   : > { %1473 = sbr.rel (%p1888_p9) target bundleno = 485 (0x1e5), region = 40  ;;  %p1889_p10 = scmp.le.s32.totalorder (!%p1888_p9), %s2770_s27, 0 }
 0x1ae   : > { %1752 = sbr.rel (%p1889_p10) target bundleno = 468 (0x1d4), region = 116  ;;  %s2904_s15 = smov (!%p1889_p10), %s2764_s25 }
 0x1af   : > { %s2905_s20 = smov (!%p1889_p10), %s2284_s12  ;;  %s2779_s23 = smov (!%p1889_p10), 0  }
 0x1b0   : > { %s2781_s28 = smov (!%p1889_p10), 0  }
 0x1b3 LB: >> { %v1598_v9 = vld [vmem:[%s2071_s20] sm:$0xff]  ;;  %v1600_v15 = vld [vmem:[%s2071_s20 + $0x8] sm:$0xff]  ;;  %v1602_v36 = vld [vmem:[%s2071_s20 + $0x10] sm:$0xff]  ;;  %s1662_s29 = sadd.s32 1, %s2075_s23  ;;  %s1592_s28 = sadd.s32 1, %s2079_s28   ;;  %s2079_s28 = sphi %s2781_s28, %s1592_s28   ;;  %s2075_s23 = sphi %s2779_s23, %s2908_s23   ;;  %s2071_s20 = sphi %s2905_s20, %s2907_s20   ;;  %s2067_s15 = sphi %s2904_s15, %s2906_s15  }
 0x1b4   : >> { %1599 = vst [vmem:[%s2067_s15] sm:$0xff] %v1598_v9  ;;  %v1604_v16 = vld [vmem:[%s2071_s20 + $0x18] sm:$0xff]  ;;  %p1663_p11 = scmp.ge.s32.totalorder %s1662_s29, %s2770_s27  ;;  %v1606_v17 = vld [vmem:[%s2071_s20 + $0x20] sm:$0xff]  ;;  %v1608_v18 = vld [vmem:[%s2071_s20 + $0x28] sm:$0xff]  ;;  %p1591_p12 = scmp.ge.s32.totalorder %s1592_s28, %s2770_s27 }
 0x1b5   : >> { %1601 = vst [vmem:[%s2067_s15 + $0x8] sm:$0xff] %v1600_v15  ;;  %v1610_v19 = vld [vmem:[%s2071_s20 + $0x30] sm:$0xff]  ;;  %v1612_v20 = vld [vmem:[%s2071_s20 + $0x38] sm:$0xff]  ;;  %v1614_v21 = vld [vmem:[%s2071_s20 + $0x40] sm:$0xff] }
 0x1b6   : >> { %1603 = vst [vmem:[%s2067_s15 + $0x10] sm:$0xff] %v1602_v36  ;;  %s2915_s29 = smov (%p1663_p11, %s1662_s29), 0  ;;  %v1616_v22 = vld [vmem:[%s2071_s20 + $0x48] sm:$0xff]  ;;  %v1618_v23 = vld [vmem:[%s2071_s20 + $0x50] sm:$0xff]  ;;  %v1620_v24 = vld [vmem:[%s2071_s20 + $0x58] sm:$0xff] }
 0x1b7   : >> { %1605 = vst [vmem:[%s2067_s15 + $0x18] sm:$0xff] %v1604_v16  ;;  %s1890_s30 = sshll.u32 %s2915_s29, 8  ;;  %v1622_v25 = vld [vmem:[%s2071_s20 + $0x60] sm:$0xff]  ;;  %v1624_v26 = vld [vmem:[%s2071_s20 + $0x68] sm:$0xff]  ;;  %v1626_v27 = vld [vmem:[%s2071_s20 + $0x70] sm:$0xff]  ;;  %s2908_s23 = smov %s2915_s29 }
 0x1b8   : >> { %1607 = vst [vmem:[%s2067_s15 + $0x20] sm:$0xff] %v1606_v17  ;;  %s2813_s4 = scalar_lea.vmem %s2284_s12, %s1890_s30 [#allocation2]   ;;  %s2816_s5 = scalar_lea.vmem %s2764_s25, %s1890_s30   ;;  %v1628_v28 = vld [vmem:[%s2071_s20 + $0x78] sm:$0xff]  ;;  %v1630_v29 = vld [vmem:[%s2071_s20 + $0x80] sm:$0xff]  ;;  %v1632_v30 = vld [vmem:[%s2071_s20 + $0x88] sm:$0xff] }
 0x1b9   : >> { %1609 = vst [vmem:[%s2067_s15 + $0x28] sm:$0xff] %v1608_v18  ;;  %v1634_v31 = vld [vmem:[%s2071_s20 + $0x90] sm:$0xff]  ;;  %v1636_v32 = vld [vmem:[%s2071_s20 + $0x98] sm:$0xff]  ;;  %v1638_v33 = vld [vmem:[%s2071_s20 + $0xa0] sm:$0xff] }
 0x1ba   : >> { %1611 = vst [vmem:[%s2067_s15 + $0x30] sm:$0xff] %v1610_v19  ;;  %v1640_v34 = vld [vmem:[%s2071_s20 + $0xa8] sm:$0xff]  ;;  %v1642_v35 = vld [vmem:[%s2071_s20 + $0xb0] sm:$0xff]  ;;  %v1644_v37 = vld [vmem:[%s2071_s20 + $0xb8] sm:$0xff] }
 0x1bb   : >> { %1613 = vst [vmem:[%s2067_s15 + $0x38] sm:$0xff] %v1612_v20  ;;  %v1646_v38 = vld [vmem:[%s2071_s20 + $0xc0] sm:$0xff]  ;;  %v1648_v39 = vld [vmem:[%s2071_s20 + $0xc8] sm:$0xff]  ;;  %v1650_v40 = vld [vmem:[%s2071_s20 + $0xd0] sm:$0xff] }
 0x1bc   : >> { %1615 = vst [vmem:[%s2067_s15 + $0x40] sm:$0xff] %v1614_v21  ;;  %v1652_v41 = vld [vmem:[%s2071_s20 + $0xd8] sm:$0xff]  ;;  %v1654_v42 = vld [vmem:[%s2071_s20 + $0xe0] sm:$0xff]  ;;  %v1656_v43 = vld [vmem:[%s2071_s20 + $0xe8] sm:$0xff] }
 0x1bd   : >> { %1617 = vst [vmem:[%s2067_s15 + $0x48] sm:$0xff] %v1616_v22  ;;  %v1658_v44 = vld [vmem:[%s2071_s20 + $0xf0] sm:$0xff]  ;;  %v1660_v45 = vld [vmem:[%s2071_s20 + $0xf8] sm:$0xff]  ;;  %s2907_s20 = smov %s2813_s4 }
 0x1be   : >> { %1619 = vst [vmem:[%s2067_s15 + $0x50] sm:$0xff] %v1618_v23 }
 0x1bf   : >> { %1621 = vst [vmem:[%s2067_s15 + $0x58] sm:$0xff] %v1620_v24 }
 0x1c0   : >> { %1623 = vst [vmem:[%s2067_s15 + $0x60] sm:$0xff] %v1622_v25 }
 0x1c1   : >> { %1625 = vst [vmem:[%s2067_s15 + $0x68] sm:$0xff] %v1624_v26 }
 0x1c2   : >> { %1627 = vst [vmem:[%s2067_s15 + $0x70] sm:$0xff] %v1626_v27 }
 0x1c3   : >> { %1629 = vst [vmem:[%s2067_s15 + $0x78] sm:$0xff] %v1628_v28 }
 0x1c4   : >> { %1631 = vst [vmem:[%s2067_s15 + $0x80] sm:$0xff] %v1630_v29 }
 0x1c5   : >> { %1633 = vst [vmem:[%s2067_s15 + $0x88] sm:$0xff] %v1632_v30 }
 0x1c6   : >> { %1635 = vst [vmem:[%s2067_s15 + $0x90] sm:$0xff] %v1634_v31 }
 0x1c7   : >> { %1637 = vst [vmem:[%s2067_s15 + $0x98] sm:$0xff] %v1636_v32 }
 0x1c8   : >> { %1639 = vst [vmem:[%s2067_s15 + $0xa0] sm:$0xff] %v1638_v33 }
 0x1c9   : >> { %1641 = vst [vmem:[%s2067_s15 + $0xa8] sm:$0xff] %v1640_v34 }
 0x1ca   : >> { %1643 = vst [vmem:[%s2067_s15 + $0xb0] sm:$0xff] %v1642_v35 }
 0x1cb   : >> { %1645 = vst [vmem:[%s2067_s15 + $0xb8] sm:$0xff] %v1644_v37 }
 0x1cc   : >> { %1647 = vst [vmem:[%s2067_s15 + $0xc0] sm:$0xff] %v1646_v38 }
 0x1cd   : >> { %1649 = vst [vmem:[%s2067_s15 + $0xc8] sm:$0xff] %v1648_v39 }
 0x1ce   : >> { %1651 = vst [vmem:[%s2067_s15 + $0xd0] sm:$0xff] %v1650_v40 }
 0x1cf   : >> { %1653 = vst [vmem:[%s2067_s15 + $0xd8] sm:$0xff] %v1652_v41  ;;  %1594 = sbr.rel (!%p1591_p12) target bundleno = 435 (0x1b3), region = 122 }
 0x1d0   : >> { %1655 = vst [vmem:[%s2067_s15 + $0xe0] sm:$0xff] %v1654_v42 }
 0x1d1   : >> { %1657 = vst [vmem:[%s2067_s15 + $0xe8] sm:$0xff] %v1656_v43 }
 0x1d2   : >> { %1659 = vst [vmem:[%s2067_s15 + $0xf0] sm:$0xff] %v1658_v44 }
 0x1d3   : >> { %1661 = vst [vmem:[%s2067_s15 + $0xf8] sm:$0xff] %v1660_v45  ;;  %s2906_s15 = smov %s2816_s5 }
 0x1d4 PF: > { %s2881_s6 = sand.u32 31, %s2913_s18   ;;  %s1905_s7 = sshll.u32 %s2770_s27, 8 }
 0x1d5   : > { %s1673_s8 = scalar_lea.vmem %s2284_s12, %s1905_s7 [#allocation2]   ;;  %s1675_s9 = scalar_lea.vmem %s2764_s25, %s1905_s7  }
 0x1d6   : > { %p1895_p13 = scmp.le.s32.totalorder %s2881_s6, 0 }
 0x1d7   : > { %s2081_s10 = smov (!%p1895_p13), %s1675_s9   ;;  %s2085_s11 = smov (!%p1895_p13), %s1673_s8  }
 0x1d8   : > { %1766 = sbr.rel (%p1895_p13) target bundleno = 485 (0x1e5), region = 127  ;;  %s2089_s14 = smov (!%p1895_p13), 0  }
 0x1d9   : > { %s2093_s17 = smov (!%p1895_p13), 0  }
 0x1dd LB: >> { %v1685_v46 = vld [vmem:[%s2087_s11] sm:$0xff]  ;;  %s1687_s18 = sadd.s32 1, %s2091_s14  ;;  %s1679_s17 = sadd.s32 1, %s2095_s17   ;;  %s2095_s17 = sphi %s2093_s17, %s1679_s17   ;;  %s2091_s14 = sphi %s2089_s14, %s2090_s14   ;;  %s2087_s11 = sphi %s2085_s11, %s1692_s11   ;;  %s2083_s10 = sphi %s2081_s10, %s1693_s10  }
 0x1de   : >> { %1686 = vst [vmem:[%s2083_s10] sm:$0xff] %v1685_v46  ;;  %p1688_p0 = scmp.ge.s32.totalorder %s1687_s18, %s2881_s6  ;;  %p1678_p1 = scmp.ge.s32.totalorder %s1679_s17, %s2881_s6 }
 0x1e0   : >> { %s2917_s18 = smov (%p1688_p0, %s1687_s18), 0  ;;  %1681 = sbr.rel (!%p1678_p1) target bundleno = 477 (0x1dd), region = 133 }
 0x1e1   : >> { %s1896_s12 = sshll.u32 %s2917_s18, 3  ;;  %s2090_s14 = smov %s2917_s18  }
 0x1e2   : >> { %s1692_s11 = scalar_lea.vmem %s1673_s8, %s1896_s12 [#allocation2]   ;;  %s1693_s10 = scalar_lea.vmem %s1675_s9, %s1896_s12  }
 0x1e5 PF: > { %p10_p2 = scmp.ge.s32.totalorder %s2132_s16, 5   ;;  %s2909_s12 = smov %s2059_s13 }
 0x1e6   : > { %s2910_s13 = smov %s2140_s19  ;;  %s2911_s14 = smov %s2132_s16 }
 0x1e7   :  { %12 = sbr.rel (!%p10_p2) target bundleno = 2 (0x2), region = 144 }

</bundles_post_ra>
